<compile_context>
chip_gen: v5e
topology: v5e:2x2
jax: 0.10.0
libtpu: 0.0.40
codegen_flags: <defaults>
</compile_context>

<pallas_src>
import functools

import jax
import jax.numpy as jnp
from jax import lax
from jax.experimental import pallas as pl
from jax.experimental.pallas import tpu as pltpu


# ----------------------------------------------------------------------------
# helpers
# ----------------------------------------------------------------------------
def _pick_tile(n, cap):
    """Largest power-of-two tile <= cap that divides n (falls back to n)."""
    for t in (512, 256, 128, 64, 32, 16, 8):
        if t <= cap and n % t == 0:
            return t
    return n


def _vmem_limit(est_bytes):
    """Explicit scoped-VMEM budget (double-buffer estimate, v7x-safe cap)."""
    return int(max(16 * 1024 * 1024, min(2 * est_bytes, 48 * 1024 * 1024)))


# ----------------------------------------------------------------------------
# Kernel 1: band (sliding-window) flash attention.
# q/k/v/out refs: (1, TQ, H).  Scratch: m/l (nh, TQ, 1), acc (nh, TQ, Dh).
# ----------------------------------------------------------------------------
def _band_flash_kernel(q_ref, k_ref, v_ref, o_ref, m_ref, l_ref, acc_ref, *,
                       window, num_heads, head_dim, q_tile, num_q_blocks,
                       kv_lo, num_kv_steps, mxu_dtype):
    qi = pl.program_id(1)
    ki = pl.program_id(2)

    kv_blk = qi + kv_lo + ki                       # intended kv block (unclamped)
    valid = jnp.logical_and(kv_blk >= 0, kv_blk < num_q_blocks)

    # ---- reset online-softmax state at the first KV step --------------------
    @pl.when(ki == 0)
    def _():
        m_ref[...] = jnp.full_like(m_ref, -jnp.inf)
        l_ref[...] = jnp.zeros_like(l_ref)
        acc_ref[...] = jnp.zeros_like(acc_ref)

    tq = q_tile
    tk = q_tile
    q0 = qi * tq
    k0 = kv_blk * tk
    d = k0 - q0
    # Block is fully inside the band iff every |q - k| <= window.
    needs_mask = jnp.logical_or(d < tq - 1 - window, d > window - tk + 1)

    q_all = q_ref[0]                               # (TQ, H), lane-dense load
    k_all = k_ref[0]
    v_all = v_ref[0]
    if mxu_dtype is not None:                      # optional bf16 MXU operands
        q_all = q_all.astype(mxu_dtype)
        k_all = k_all.astype(mxu_dtype)
        v_all = v_all.astype(mxu_dtype)

    def update(band):
        for h in range(num_heads):                 # static unroll over heads
            sl = slice(h * head_dim, (h + 1) * head_dim)
            qh, kh, vh = q_all[:, sl], k_all[:, sl], v_all[:, sl]
            # q @ k^T without forming a transpose of k.
            s = lax.dot_general(qh, kh,
                                dimension_numbers=(((1,), (1,)), ((), ())),
                                preferred_element_type=jnp.float32)   # (TQ, TK)
            if band is not None:
                s = jnp.where(band, s, jnp.float32(-1e30))
            m_prev = m_ref[h]                                          # (TQ, 1)
            m_new = jnp.maximum(m_prev, jnp.max(s, axis=-1, keepdims=True))
            alpha = jnp.exp(m_prev - m_new)
            p = jnp.exp(s - m_new)
            l_ref[h] = alpha * l_ref[h] + jnp.sum(p, axis=-1, keepdims=True)
            acc_ref[h] = alpha * acc_ref[h] + jnp.dot(
                p.astype(vh.dtype), vh, preferred_element_type=jnp.float32)
            m_ref[h] = m_new

    # Edge blocks of the band need the iota mask (computed once, shared by all
    # heads); interior blocks skip the mask work entirely.
    @pl.when(jnp.logical_and(valid, needs_mask))
    def _():
        rows = q0 + lax.broadcasted_iota(jnp.int32, (tq, tk), 0)
        cols = k0 + lax.broadcasted_iota(jnp.int32, (tq, tk), 1)
        update(jnp.abs(rows - cols) <= window)

    @pl.when(jnp.logical_and(valid, jnp.logical_not(needs_mask)))
    def _():
        update(None)

    # ---- finalize at the last KV step: normalize and store lane-dense -------
    @pl.when(ki == num_kv_steps - 1)
    def _():
        outs = []
        for h in range(num_heads):
            inv_l = pl.reciprocal(l_ref[h], approx=True)   # EUP slot (~free)
            outs.append(acc_ref[h] * inv_l)
        o_ref[0] = jnp.concatenate(outs, axis=-1).astype(o_ref.dtype)


def sliding_window_attention(src, *, num_heads, window, q_tile=128,
                             mxu_dtype=None):
    """Band (sliding-window) self-attention.  src: (B, S, H) -> (B, S, H)."""
    B, S, H = src.shape
    if H % num_heads != 0:
        raise ValueError("hidden_size must be divisible by num_heads")
    head_dim = H // num_heads

    tq = _pick_tile(S, q_tile)
    num_q_blocks = S // tq

    # KV block offsets (relative to the query block) that intersect the band.
    kv_lo = -((window + tq - 1) // tq)
    kv_hi = (tq - 1 + window) // tq
    kv_lo = max(kv_lo, -(num_q_blocks - 1))
    kv_hi = min(kv_hi, num_q_blocks - 1)
    num_kv_steps = kv_hi - kv_lo + 1

    def q_index_map(b, qi, ki):
        return (b, qi, 0)

    def kv_index_map(b, qi, ki):
        blk = qi + kv_lo + ki
        blk = jnp.maximum(0, jnp.minimum(blk, num_q_blocks - 1))
        return (b, blk, 0)

    kernel = functools.partial(
        _band_flash_kernel, window=window, num_heads=num_heads,
        head_dim=head_dim, q_tile=tq, num_q_blocks=num_q_blocks,
        kv_lo=kv_lo, num_kv_steps=num_kv_steps, mxu_dtype=mxu_dtype)

    itemsize = src.dtype.itemsize
    blk_bytes = tq * H * itemsize
    est = (2 * 4 * blk_bytes                       # q/k/v/out, double-buffered
           + num_heads * tq * (head_dim + 2) * 4   # m/l/acc scratch
           + 4 * tq * tq * 4)                      # score/prob intermediates

    return pl.pallas_call(
        kernel,
        out_shape=jax.ShapeDtypeStruct((B, S, H), src.dtype),
        grid_spec=pltpu.PrefetchScalarGridSpec(
            num_scalar_prefetch=0,
            grid=(B, num_q_blocks, num_kv_steps),
            in_specs=[
                pl.BlockSpec((1, tq, H), q_index_map),    # q
                pl.BlockSpec((1, tq, H), kv_index_map),   # k
                pl.BlockSpec((1, tq, H), kv_index_map),   # v
            ],
            out_specs=pl.BlockSpec((1, tq, H), q_index_map),
            scratch_shapes=[
                pltpu.VMEM((num_heads, tq, 1), jnp.float32),         # m
                pltpu.VMEM((num_heads, tq, 1), jnp.float32),         # l
                pltpu.VMEM((num_heads, tq, head_dim), jnp.float32),  # acc
            ],
        ),
        compiler_params=pltpu.CompilerParams(
            dimension_semantics=("parallel", "parallel", "arbitrary"),
            vmem_limit_bytes=_vmem_limit(est),
        ),
    )(src, src, src)


# ----------------------------------------------------------------------------
# Kernel 2: fused residual + LayerNorm1 + FFN + residual + LayerNorm2.
# Token-tiled: grid over (N // TN) token tiles, weights VMEM-resident.
# ----------------------------------------------------------------------------
def _ln_ffn_kernel(src_ref, attn_ref, g1_ref, bt1_ref, w1_ref, b1_ref,
                   w2_ref, b2_ref, g2_ref, bt2_ref, out_ref):
    eps = jnp.float32(1e-5)

    def layer_norm(x, g, b):
        mu = jnp.mean(x, axis=-1, keepdims=True)
        xc = x - mu
        var = jnp.mean(xc * xc, axis=-1, keepdims=True)
        return xc * lax.rsqrt(var + eps) * g + b

    # residual 1 + norm1 (f32 math)
    x = src_ref[...].astype(jnp.float32) + attn_ref[...].astype(jnp.float32)
    h = layer_norm(x, g1_ref[...].astype(jnp.float32),
                   bt1_ref[...].astype(jnp.float32))

    # feed-forward: Linear -> ReLU -> Linear (dropout = identity)
    ff = jnp.dot(h.astype(w1_ref.dtype), w1_ref[...],
                 preferred_element_type=jnp.float32) + b1_ref[...].astype(jnp.float32)
    ff = jnp.maximum(ff, 0.0)
    ff = jnp.dot(ff.astype(w2_ref.dtype), w2_ref[...],
                 preferred_element_type=jnp.float32) + b2_ref[...].astype(jnp.float32)

    # residual 2 + norm2
    out = layer_norm(h + ff, g2_ref[...].astype(jnp.float32),
                     bt2_ref[...].astype(jnp.float32))
    out_ref[...] = out.astype(out_ref.dtype)


def fused_residual_ln_ffn(src2d, attn2d, params, *, token_tile=256):
    """src2d, attn2d: (N, H) -> (N, H)."""
    N, H = src2d.shape
    F = params["w1"].shape[1]
    tn = _pick_tile(N, token_tile)
    grid = (pl.cdiv(N, tn),)

    row_spec = pl.BlockSpec((tn, H), lambda i: (i, 0))

    def full_spec(shape):
        return pl.BlockSpec(shape, lambda i: (0, 0))

    itemsize = src2d.dtype.itemsize
    w_bytes = (H * F + F * H) * params["w1"].dtype.itemsize
    est = 2 * 3 * tn * H * itemsize + w_bytes + 2 * tn * F * 4

    return pl.pallas_call(
        _ln_ffn_kernel,
        out_shape=jax.ShapeDtypeStruct((N, H), src2d.dtype),
        grid=grid,
        in_specs=[
            row_spec, row_spec,
            full_spec((1, H)), full_spec((1, H)),   # ln1 gamma/beta
            full_spec((H, F)), full_spec((1, F)),   # W1, b1
            full_spec((F, H)), full_spec((1, H)),   # W2, b2
            full_spec((1, H)), full_spec((1, H)),   # ln2 gamma/beta
        ],
        out_specs=row_spec,
        compiler_params=pltpu.CompilerParams(
            dimension_semantics=("parallel",),
            vmem_limit_bytes=_vmem_limit(est),
        ),
    )(src2d, attn2d,
      params["ln1_g"], params["ln1_b"],
      params["w1"], params["b1"],
      params["w2"], params["b2"],
      params["ln2_g"], params["ln2_b"])


# ----------------------------------------------------------------------------
# Full layer
# ----------------------------------------------------------------------------
def transformer_layer_forward(src, params, *, num_heads, attention_window,
                              q_tile=128, token_tile=256, mxu_dtype=None):
    """src: (B, S, H) -> (B, S, H)."""
    B, S, H = src.shape
    if S % (attention_window * 2) != 0:
        raise ValueError("Sequence length must be a multiple of attention window size")

    attn = sliding_window_attention(src, num_heads=num_heads,
                                    window=attention_window,
                                    q_tile=q_tile, mxu_dtype=mxu_dtype)
    N = B * S
    out2d = fused_residual_ln_ffn(src.reshape(N, H), attn.reshape(N, H),
                                  params, token_tile=token_tile)
    return out2d.reshape(B, S, H)


def init_params(key, hidden_size, feedforward_dim, dtype=jnp.float32):
    k1, k2 = jax.random.split(key, 2)
    return {
        "ln1_g": jnp.ones((1, hidden_size), dtype),
        "ln1_b": jnp.zeros((1, hidden_size), dtype),
        "ln2_g": jnp.ones((1, hidden_size), dtype),
        "ln2_b": jnp.zeros((1, hidden_size), dtype),
        # Linear weights stored transposed to (in, out) for x @ W.
        "w1": (jax.random.normal(k1, (hidden_size, feedforward_dim), dtype)
               * (1.0 / jnp.sqrt(hidden_size))),
        "b1": jnp.zeros((1, feedforward_dim), dtype),
        "w2": (jax.random.normal(k2, (feedforward_dim, hidden_size), dtype)
               * (1.0 / jnp.sqrt(feedforward_dim))),
        "b2": jnp.zeros((1, hidden_size), dtype),
    }


# ----------------------------------------------------------------------------
# Pure-JAX reference (same band-mask semantics) for an in-script sanity check.
# ----------------------------------------------------------------------------
def _reference_forward(src, params, *, num_heads, attention_window):
    B, S, H = src.shape
    Dh = H // num_heads
    q = src.reshape(B, S, num_heads, Dh).transpose(0, 2, 1, 3)   # (B, nh, S, Dh)
    scores = jnp.einsum("bhqd,bhkd->bhqk", q, q)
    idx = jnp.arange(S)
    band = jnp.abs(idx[:, None] - idx[None, :]) <= attention_window
    scores = jnp.where(band[None, None], scores, -jnp.inf)
    p = jax.nn.softmax(scores, axis=-1)
    attn = jnp.einsum("bhqk,bhkd->bhqd", p, q)
    attn = attn.transpose(0, 2, 1, 3).reshape(B, S, H)

    def ln(x, g, b):
        mu = x.mean(-1, keepdims=True)
        var = ((x - mu) ** 2).mean(-1, keepdims=True)
        return (x - mu) * lax.rsqrt(var + 1e-5) * g + b

    h = ln(src + attn, params["ln1_g"], params["ln1_b"])
    ff = jnp.maximum(h @ params["w1"] + params["b1"], 0.0) @ params["w2"] + params["b2"]
    return ln(h + ff, params["ln2_g"], params["ln2_b"])


if __name__ == "__main__":
    B, S, H = 2, 32, 32
    num_heads = 4
    attention_window = 8          # S % (2*w) == 0
    feedforward_dim = 64

    key = jax.random.PRNGKey(0)
    k_src, k_params = jax.random.split(key)
    src = jax.random.normal(k_src, (B, S, H), jnp.float32)
    params = init_params(k_params, H, feedforward_dim)

    # q_tile=8 so this small example exercises multi-block flash tiling:
    # masked edge blocks, unmasked interior blocks, and out-of-range skips.
    out = transformer_layer_forward(src, params,
                                    num_heads=num_heads,
                                    attention_window=attention_window,
                                    q_tile=8)
    out = jax.block_until_ready(out)
    assert out.shape == (B, S, H)
    assert bool(jnp.all(jnp.isfinite(out)))

    ref = _reference_forward(src, params, num_heads=num_heads,
                             attention_window=attention_window)
    assert bool(jnp.allclose(out, ref, rtol=2e-2, atol=2e-2)), \
        float(jnp.max(jnp.abs(out - ref)))
    print("KERNEL_OK")
</pallas_src>

<mosaic_0001>
module attributes {stable_mosaic.version = 11 : i64} {
  func.func @_band_flash_kernel(%arg0: i32, %arg1: i32, %arg2: i32, %arg3: memref<1x8x32xf32, #tpu.memory_space<vmem>>, %arg4: memref<1x8x32xf32, #tpu.memory_space<vmem>>, %arg5: memref<1x8x32xf32, #tpu.memory_space<vmem>>, %arg6: memref<1x8x32xf32, #tpu.memory_space<vmem>>, %arg7: memref<4x8x1xf32, #tpu.memory_space<vmem>>, %arg8: memref<4x8x1xf32, #tpu.memory_space<vmem>>, %arg9: memref<4x8x8xf32, #tpu.memory_space<vmem>>) attributes {dimension_semantics = [#tpu.dimension_semantics<parallel>, #tpu.dimension_semantics<parallel>, #tpu.dimension_semantics<arbitrary>], iteration_bounds = array<i64: 2, 4, 3>, scalar_prefetch = 0 : i64, scratch_operands = 3 : i64, tpu.core_type = #tpu.core_type<tc>, window_params = [{transform_indices = @transform_0, window_bounds = array<i64: 1, 8, 32>}, {transform_indices = @transform_1, window_bounds = array<i64: 1, 8, 32>}, {transform_indices = @transform_2, window_bounds = array<i64: 1, 8, 32>}, {transform_indices = @transform_3, window_bounds = array<i64: 1, 8, 32>}]} {
    %c-1_i32 = arith.constant -1 : i32
    %0 = arith.addi %arg1, %c-1_i32 : i32
    %1 = arith.addi %0, %arg2 : i32
    %c0_i32 = arith.constant 0 : i32
    %2 = arith.cmpi sge, %1, %c0_i32 : i32
    %c4_i32 = arith.constant 4 : i32
    %3 = arith.cmpi slt, %1, %c4_i32 : i32
    %4 = arith.andi %2, %3 : i1
    %c0_i32_0 = arith.constant 0 : i32
    %5 = arith.cmpi eq, %arg2, %c0_i32_0 : i32
    %6 = arith.extui %5 : i1 to i32
    %c0_i32_1 = arith.constant 0 : i32
    %7 = arith.cmpi ne, %6, %c0_i32_1 : i32
    scf.if %7 {
      %cst = arith.constant 0xFF800000 : f32
      %30 = vector.broadcast %cst : f32 to vector<4x8x1xf32>
      %c0_15 = arith.constant 0 : index
      %c0_16 = arith.constant 0 : index
      %c0_17 = arith.constant 0 : index
      %31 = vector.load %arg7[%c0_15, %c0_16, %c0_17] : memref<4x8x1xf32, #tpu.memory_space<vmem>>, vector<4x8x1xf32>
      tpu.vector_store %arg7[%c0_15, %c0_16, %c0_17], %30 {strides = array<i32>} : memref<4x8x1xf32, #tpu.memory_space<vmem>>, vector<4x8x1xf32>,
      %cst_18 = arith.constant 0.000000e+00 : f32
      %32 = vector.broadcast %cst_18 : f32 to vector<4x8x1xf32>
      %c0_19 = arith.constant 0 : index
      %c0_20 = arith.constant 0 : index
      %c0_21 = arith.constant 0 : index
      %33 = vector.load %arg8[%c0_19, %c0_20, %c0_21] : memref<4x8x1xf32, #tpu.memory_space<vmem>>, vector<4x8x1xf32>
      tpu.vector_store %arg8[%c0_19, %c0_20, %c0_21], %32 {strides = array<i32>} : memref<4x8x1xf32, #tpu.memory_space<vmem>>, vector<4x8x1xf32>,
      %cst_22 = arith.constant 0.000000e+00 : f32
      %34 = vector.broadcast %cst_22 : f32 to vector<4x8x8xf32>
      %c0_23 = arith.constant 0 : index
      %c0_24 = arith.constant 0 : index
      %c0_25 = arith.constant 0 : index
      %35 = vector.load %arg9[%c0_23, %c0_24, %c0_25] : memref<4x8x8xf32, #tpu.memory_space<vmem>>, vector<4x8x8xf32>
      tpu.vector_store %arg9[%c0_23, %c0_24, %c0_25], %34 {strides = array<i32>} : memref<4x8x8xf32, #tpu.memory_space<vmem>>, vector<4x8x8xf32>,
    } else {
    }
    %c8_i32 = arith.constant 8 : i32
    %8 = arith.muli %arg1, %c8_i32 : i32
    %c8_i32_2 = arith.constant 8 : i32
    %9 = arith.muli %1, %c8_i32_2 : i32
    %10 = arith.subi %9, %8 : i32
    %c-1_i32_3 = arith.constant -1 : i32
    %11 = arith.cmpi slt, %10, %c-1_i32_3 : i32
    %c1_i32 = arith.constant 1 : i32
    %12 = arith.cmpi sgt, %10, %c1_i32 : i32
    %13 = arith.ori %11, %12 : i1
    %c0 = arith.constant 0 : index
    %c0_4 = arith.constant 0 : index
    %c0_5 = arith.constant 0 : index
    %14 = vector.load %arg3[%c0, %c0_4, %c0_5] : memref<1x8x32xf32, #tpu.memory_space<vmem>>, vector<1x8x32xf32>
    %15 = vector.shape_cast %14 : vector<1x8x32xf32> to vector<8x32xf32>
    %c0_6 = arith.constant 0 : index
    %c0_7 = arith.constant 0 : index
    %c0_8 = arith.constant 0 : index
    %16 = vector.load %arg4[%c0_6, %c0_7, %c0_8] : memref<1x8x32xf32, #tpu.memory_space<vmem>>, vector<1x8x32xf32>
    %17 = vector.shape_cast %16 : vector<1x8x32xf32> to vector<8x32xf32>
    %c0_9 = arith.constant 0 : index
    %c0_10 = arith.constant 0 : index
    %c0_11 = arith.constant 0 : index
    %18 = vector.load %arg5[%c0_9, %c0_10, %c0_11] : memref<1x8x32xf32, #tpu.memory_space<vmem>>, vector<1x8x32xf32>
    %19 = vector.shape_cast %18 : vector<1x8x32xf32> to vector<8x32xf32>
    %20 = arith.andi %4, %13 : i1
    %21 = arith.extui %20 : i1 to i32
    %c0_i32_12 = arith.constant 0 : i32
    %22 = arith.cmpi ne, %21, %c0_i32_12 : i32
    scf.if %22 {
      %30 = tpu.iota {dimensions = array<i32: 0>} : vector<8x8xi32>
      %31 = vector.broadcast %8 : i32 to vector<8x8xi32>
      %32 = arith.addi %31, %30 : vector<8x8xi32>
      %33 = tpu.iota {dimensions = array<i32: 1>} : vector<8x8xi32>
      %34 = vector.broadcast %9 : i32 to vector<8x8xi32>
      %35 = arith.addi %34, %33 : vector<8x8xi32>
      %36 = arith.subi %32, %35 : vector<8x8xi32>
      %37 = math.absi %36 : vector<8x8xi32>
      %c8_i32_15 = arith.constant 8 : i32
      %38 = vector.broadcast %c8_i32_15 : i32 to vector<8x8xi32>
      %39 = arith.cmpi sle, %37, %38 : vector<8x8xi32>
      %40 = vector.extract_strided_slice %15 {offsets = [0, 0], sizes = [8, 8], strides = [1, 1]} : vector<8x32xf32> to vector<8x8xf32>
      %41 = vector.extract_strided_slice %17 {offsets = [0, 0], sizes = [8, 8], strides = [1, 1]} : vector<8x32xf32> to vector<8x8xf32>
      %42 = vector.extract_strided_slice %19 {offsets = [0, 0], sizes = [8, 8], strides = [1, 1]} : vector<8x32xf32> to vector<8x8xf32>
      %cst = arith.constant dense<0.000000e+00> : vector<8x8xf32>
      %43 = tpu.matmul %40, %41, %cst {dimension_numbers = #tpu.dot_dimension_numbers<[1], [1], [0], [0], [0, 0, 1, 0], [], []>} : vector<8x8xf32>, vector<8x8xf32>, vector<8x8xf32> -> vector<8x8xf32>
      %cst_16 = arith.constant -1.000000e+30 : f32
      %44 = vector.broadcast %cst_16 : f32 to vector<8x8xf32>
      %45 = arith.select %39, %43, %44 : vector<8x8xi1>, vector<8x8xf32>
      %c0_17 = arith.constant 0 : index
      %c0_18 = arith.constant 0 : index
      %c0_19 = arith.constant 0 : index
      %46 = vector.load %arg7[%c0_17, %c0_18, %c0_19] : memref<4x8x1xf32, #tpu.memory_space<vmem>>, vector<1x8x1xf32>
      %47 = vector.shape_cast %46 : vector<1x8x1xf32> to vector<8x1xf32>
      %cst_20 = arith.constant dense<0xFF800000> : vector<8xf32>
      %48 = vector.multi_reduction <maximumf>, %45, %cst_20 [1] : vector<8x8xf32> to vector<8xf32>
      %49 = vector.shape_cast %48 : vector<8xf32> to vector<8x1xf32>
      %50 = arith.maximumf %47, %49 : vector<8x1xf32>
      %51 = arith.subf %47, %50 : vector<8x1xf32>
      %52 = math.exp %51 : vector<8x1xf32>
      %53 = vector.broadcast %50 : vector<8x1xf32> to vector<8x8xf32>
      %54 = arith.subf %45, %53 : vector<8x8xf32>
      %55 = math.exp %54 : vector<8x8xf32>
      %c0_21 = arith.constant 0 : index
      %c0_22 = arith.constant 0 : index
      %c0_23 = arith.constant 0 : index
      %56 = vector.load %arg8[%c0_21, %c0_22, %c0_23] : memref<4x8x1xf32, #tpu.memory_space<vmem>>, vector<1x8x1xf32>
      %57 = vector.shape_cast %56 : vector<1x8x1xf32> to vector<8x1xf32>
      %58 = arith.mulf %52, %57 : vector<8x1xf32>
      %cst_24 = arith.constant dense<0.000000e+00> : vector<8xf32>
      %59 = vector.multi_reduction <add>, %55, %cst_24 [1] : vector<8x8xf32> to vector<8xf32>
      %60 = vector.shape_cast %59 : vector<8xf32> to vector<8x1xf32>
      %61 = arith.addf %58, %60 : vector<8x1xf32>
      %c0_25 = arith.constant 0 : index
      %c0_26 = arith.constant 0 : index
      %c0_27 = arith.constant 0 : index
      %62 = vector.load %arg8[%c0_25, %c0_26, %c0_27] : memref<4x8x1xf32, #tpu.memory_space<vmem>>, vector<1x8x1xf32>
      %63 = vector.shape_cast %62 : vector<1x8x1xf32> to vector<8x1xf32>
      %64 = vector.shape_cast %61 : vector<8x1xf32> to vector<1x8x1xf32>
      tpu.vector_store %arg8[%c0_25, %c0_26, %c0_27], %64 {strides = array<i32>} : memref<4x8x1xf32, #tpu.memory_space<vmem>>, vector<1x8x1xf32>,
      %c0_28 = arith.constant 0 : index
      %c0_29 = arith.constant 0 : index
      %c0_30 = arith.constant 0 : index
      %65 = vector.load %arg9[%c0_28, %c0_29, %c0_30] : memref<4x8x8xf32, #tpu.memory_space<vmem>>, vector<1x8x8xf32>
      %66 = vector.shape_cast %65 : vector<1x8x8xf32> to vector<8x8xf32>
      %67 = vector.broadcast %52 : vector<8x1xf32> to vector<8x8xf32>
      %68 = arith.mulf %67, %66 : vector<8x8xf32>
      %cst_31 = arith.constant dense<0.000000e+00> : vector<8x8xf32>
      %69 = tpu.matmul %55, %42, %cst_31 {dimension_numbers = #tpu.dot_dimension_numbers<[1], [0], [0], [1], [0, 0, 1, 1], [], []>} : vector<8x8xf32>, vector<8x8xf32>, vector<8x8xf32> -> vector<8x8xf32>
      %70 = arith.addf %68, %69 : vector<8x8xf32>
      %c0_32 = arith.constant 0 : index
      %c0_33 = arith.constant 0 : index
      %c0_34 = arith.constant 0 : index
      %71 = vector.load %arg9[%c0_32, %c0_33, %c0_34] : memref<4x8x8xf32, #tpu.memory_space<vmem>>, vector<1x8x8xf32>
      %72 = vector.shape_cast %71 : vector<1x8x8xf32> to vector<8x8xf32>
      %73 = vector.shape_cast %70 : vector<8x8xf32> to vector<1x8x8xf32>
      tpu.vector_store %arg9[%c0_32, %c0_33, %c0_34], %73 {strides = array<i32>} : memref<4x8x8xf32, #tpu.memory_space<vmem>>, vector<1x8x8xf32>,
      %c0_35 = arith.constant 0 : index
      %c0_36 = arith.constant 0 : index
      %c0_37 = arith.constant 0 : index
      %74 = vector.load %arg7[%c0_35, %c0_36, %c0_37] : memref<4x8x1xf32, #tpu.memory_space<vmem>>, vector<1x8x1xf32>
      %75 = vector.shape_cast %74 : vector<1x8x1xf32> to vector<8x1xf32>
      %76 = vector.shape_cast %50 : vector<8x1xf32> to vector<1x8x1xf32>
      tpu.vector_store %arg7[%c0_35, %c0_36, %c0_37], %76 {strides = array<i32>} : memref<4x8x1xf32, #tpu.memory_space<vmem>>, vector<1x8x1xf32>,
      %77 = vector.extract_strided_slice %15 {offsets = [0, 8], sizes = [8, 8], strides = [1, 1]} : vector<8x32xf32> to vector<8x8xf32>
      %78 = vector.extract_strided_slice %17 {offsets = [0, 8], sizes = [8, 8], strides = [1, 1]} : vector<8x32xf32> to vector<8x8xf32>
      %79 = vector.extract_strided_slice %19 {offsets = [0, 8], sizes = [8, 8], strides = [1, 1]} : vector<8x32xf32> to vector<8x8xf32>
      %cst_38 = arith.constant dense<0.000000e+00> : vector<8x8xf32>
      %80 = tpu.matmul %77, %78, %cst_38 {dimension_numbers = #tpu.dot_dimension_numbers<[1], [1], [0], [0], [0, 0, 1, 0], [], []>} : vector<8x8xf32>, vector<8x8xf32>, vector<8x8xf32> -> vector<8x8xf32>
      %cst_39 = arith.constant -1.000000e+30 : f32
      %81 = vector.broadcast %cst_39 : f32 to vector<8x8xf32>
      %82 = arith.select %39, %80, %81 : vector<8x8xi1>, vector<8x8xf32>
      %c1 = arith.constant 1 : index
      %c0_40 = arith.constant 0 : index
      %c0_41 = arith.constant 0 : index
      %83 = vector.load %arg7[%c1, %c0_40, %c0_41] : memref<4x8x1xf32, #tpu.memory_space<vmem>>, vector<1x8x1xf32>
      %84 = vector.shape_cast %83 : vector<1x8x1xf32> to vector<8x1xf32>
      %cst_42 = arith.constant dense<0xFF800000> : vector<8xf32>
      %85 = vector.multi_reduction <maximumf>, %82, %cst_42 [1] : vector<8x8xf32> to vector<8xf32>
      %86 = vector.shape_cast %85 : vector<8xf32> to vector<8x1xf32>
      %87 = arith.maximumf %84, %86 : vector<8x1xf32>
      %88 = arith.subf %84, %87 : vector<8x1xf32>
      %89 = math.exp %88 : vector<8x1xf32>
      %90 = vector.broadcast %87 : vector<8x1xf32> to vector<8x8xf32>
      %91 = arith.subf %82, %90 : vector<8x8xf32>
      %92 = math.exp %91 : vector<8x8xf32>
      %c1_43 = arith.constant 1 : index
      %c0_44 = arith.constant 0 : index
      %c0_45 = arith.constant 0 : index
      %93 = vector.load %arg8[%c1_43, %c0_44, %c0_45] : memref<4x8x1xf32, #tpu.memory_space<vmem>>, vector<1x8x1xf32>
      %94 = vector.shape_cast %93 : vector<1x8x1xf32> to vector<8x1xf32>
      %95 = arith.mulf %89, %94 : vector<8x1xf32>
      %cst_46 = arith.constant dense<0.000000e+00> : vector<8xf32>
      %96 = vector.multi_reduction <add>, %92, %cst_46 [1] : vector<8x8xf32> to vector<8xf32>
      %97 = vector.shape_cast %96 : vector<8xf32> to vector<8x1xf32>
      %98 = arith.addf %95, %97 : vector<8x1xf32>
      %c1_47 = arith.constant 1 : index
      %c0_48 = arith.constant 0 : index
      %c0_49 = arith.constant 0 : index
      %99 = vector.load %arg8[%c1_47, %c0_48, %c0_49] : memref<4x8x1xf32, #tpu.memory_space<vmem>>, vector<1x8x1xf32>
      %100 = vector.shape_cast %99 : vector<1x8x1xf32> to vector<8x1xf32>
      %101 = vector.shape_cast %98 : vector<8x1xf32> to vector<1x8x1xf32>
      tpu.vector_store %arg8[%c1_47, %c0_48, %c0_49], %101 {strides = array<i32>} : memref<4x8x1xf32, #tpu.memory_space<vmem>>, vector<1x8x1xf32>,
      %c1_50 = arith.constant 1 : index
      %c0_51 = arith.constant 0 : index
      %c0_52 = arith.constant 0 : index
      %102 = vector.load %arg9[%c1_50, %c0_51, %c0_52] : memref<4x8x8xf32, #tpu.memory_space<vmem>>, vector<1x8x8xf32>
      %103 = vector.shape_cast %102 : vector<1x8x8xf32> to vector<8x8xf32>
      %104 = vector.broadcast %89 : vector<8x1xf32> to vector<8x8xf32>
      %105 = arith.mulf %104, %103 : vector<8x8xf32>
      %cst_53 = arith.constant dense<0.000000e+00> : vector<8x8xf32>
      %106 = tpu.matmul %92, %79, %cst_53 {dimension_numbers = #tpu.dot_dimension_numbers<[1], [0], [0], [1], [0, 0, 1, 1], [], []>} : vector<8x8xf32>, vector<8x8xf32>, vector<8x8xf32> -> vector<8x8xf32>
      %107 = arith.addf %105, %106 : vector<8x8xf32>
      %c1_54 = arith.constant 1 : index
      %c0_55 = arith.constant 0 : index
      %c0_56 = arith.constant 0 : index
      %108 = vector.load %arg9[%c1_54, %c0_55, %c0_56] : memref<4x8x8xf32, #tpu.memory_space<vmem>>, vector<1x8x8xf32>
      %109 = vector.shape_cast %108 : vector<1x8x8xf32> to vector<8x8xf32>
      %110 = vector.shape_cast %107 : vector<8x8xf32> to vector<1x8x8xf32>
      tpu.vector_store %arg9[%c1_54, %c0_55, %c0_56], %110 {strides = array<i32>} : memref<4x8x8xf32, #tpu.memory_space<vmem>>, vector<1x8x8xf32>,
      %c1_57 = arith.constant 1 : index
      %c0_58 = arith.constant 0 : index
      %c0_59 = arith.constant 0 : index
      %111 = vector.load %arg7[%c1_57, %c0_58, %c0_59] : memref<4x8x1xf32, #tpu.memory_space<vmem>>, vector<1x8x1xf32>
      %112 = vector.shape_cast %111 : vector<1x8x1xf32> to vector<8x1xf32>
      %113 = vector.shape_cast %87 : vector<8x1xf32> to vector<1x8x1xf32>
      tpu.vector_store %arg7[%c1_57, %c0_58, %c0_59], %113 {strides = array<i32>} : memref<4x8x1xf32, #tpu.memory_space<vmem>>, vector<1x8x1xf32>,
      %114 = vector.extract_strided_slice %15 {offsets = [0, 16], sizes = [8, 8], strides = [1, 1]} : vector<8x32xf32> to vector<8x8xf32>
      %115 = vector.extract_strided_slice %17 {offsets = [0, 16], sizes = [8, 8], strides = [1, 1]} : vector<8x32xf32> to vector<8x8xf32>
      %116 = vector.extract_strided_slice %19 {offsets = [0, 16], sizes = [8, 8], strides = [1, 1]} : vector<8x32xf32> to vector<8x8xf32>
      %cst_60 = arith.constant dense<0.000000e+00> : vector<8x8xf32>
      %117 = tpu.matmul %114, %115, %cst_60 {dimension_numbers = #tpu.dot_dimension_numbers<[1], [1], [0], [0], [0, 0, 1, 0], [], []>} : vector<8x8xf32>, vector<8x8xf32>, vector<8x8xf32> -> vector<8x8xf32>
      %cst_61 = arith.constant -1.000000e+30 : f32
      %118 = vector.broadcast %cst_61 : f32 to vector<8x8xf32>
      %119 = arith.select %39, %117, %118 : vector<8x8xi1>, vector<8x8xf32>
      %c2 = arith.constant 2 : index
      %c0_62 = arith.constant 0 : index
      %c0_63 = arith.constant 0 : index
      %120 = vector.load %arg7[%c2, %c0_62, %c0_63] : memref<4x8x1xf32, #tpu.memory_space<vmem>>, vector<1x8x1xf32>
      %121 = vector.shape_cast %120 : vector<1x8x1xf32> to vector<8x1xf32>
      %cst_64 = arith.constant dense<0xFF800000> : vector<8xf32>
      %122 = vector.multi_reduction <maximumf>, %119, %cst_64 [1] : vector<8x8xf32> to vector<8xf32>
      %123 = vector.shape_cast %122 : vector<8xf32> to vector<8x1xf32>
      %124 = arith.maximumf %121, %123 : vector<8x1xf32>
      %125 = arith.subf %121, %124 : vector<8x1xf32>
      %126 = math.exp %125 : vector<8x1xf32>
      %127 = vector.broadcast %124 : vector<8x1xf32> to vector<8x8xf32>
      %128 = arith.subf %119, %127 : vector<8x8xf32>
      %129 = math.exp %128 : vector<8x8xf32>
      %c2_65 = arith.constant 2 : index
      %c0_66 = arith.constant 0 : index
      %c0_67 = arith.constant 0 : index
      %130 = vector.load %arg8[%c2_65, %c0_66, %c0_67] : memref<4x8x1xf32, #tpu.memory_space<vmem>>, vector<1x8x1xf32>
      %131 = vector.shape_cast %130 : vector<1x8x1xf32> to vector<8x1xf32>
      %132 = arith.mulf %126, %131 : vector<8x1xf32>
      %cst_68 = arith.constant dense<0.000000e+00> : vector<8xf32>
      %133 = vector.multi_reduction <add>, %129, %cst_68 [1] : vector<8x8xf32> to vector<8xf32>
      %134 = vector.shape_cast %133 : vector<8xf32> to vector<8x1xf32>
      %135 = arith.addf %132, %134 : vector<8x1xf32>
      %c2_69 = arith.constant 2 : index
      %c0_70 = arith.constant 0 : index
      %c0_71 = arith.constant 0 : index
      %136 = vector.load %arg8[%c2_69, %c0_70, %c0_71] : memref<4x8x1xf32, #tpu.memory_space<vmem>>, vector<1x8x1xf32>
      %137 = vector.shape_cast %136 : vector<1x8x1xf32> to vector<8x1xf32>
      %138 = vector.shape_cast %135 : vector<8x1xf32> to vector<1x8x1xf32>
      tpu.vector_store %arg8[%c2_69, %c0_70, %c0_71], %138 {strides = array<i32>} : memref<4x8x1xf32, #tpu.memory_space<vmem>>, vector<1x8x1xf32>,
      %c2_72 = arith.constant 2 : index
      %c0_73 = arith.constant 0 : index
      %c0_74 = arith.constant 0 : index
      %139 = vector.load %arg9[%c2_72, %c0_73, %c0_74] : memref<4x8x8xf32, #tpu.memory_space<vmem>>, vector<1x8x8xf32>
      %140 = vector.shape_cast %139 : vector<1x8x8xf32> to vector<8x8xf32>
      %141 = vector.broadcast %126 : vector<8x1xf32> to vector<8x8xf32>
      %142 = arith.mulf %141, %140 : vector<8x8xf32>
      %cst_75 = arith.constant dense<0.000000e+00> : vector<8x8xf32>
      %143 = tpu.matmul %129, %116, %cst_75 {dimension_numbers = #tpu.dot_dimension_numbers<[1], [0], [0], [1], [0, 0, 1, 1], [], []>} : vector<8x8xf32>, vector<8x8xf32>, vector<8x8xf32> -> vector<8x8xf32>
      %144 = arith.addf %142, %143 : vector<8x8xf32>
      %c2_76 = arith.constant 2 : index
      %c0_77 = arith.constant 0 : index
      %c0_78 = arith.constant 0 : index
      %145 = vector.load %arg9[%c2_76, %c0_77, %c0_78] : memref<4x8x8xf32, #tpu.memory_space<vmem>>, vector<1x8x8xf32>
      %146 = vector.shape_cast %145 : vector<1x8x8xf32> to vector<8x8xf32>
      %147 = vector.shape_cast %144 : vector<8x8xf32> to vector<1x8x8xf32>
      tpu.vector_store %arg9[%c2_76, %c0_77, %c0_78], %147 {strides = array<i32>} : memref<4x8x8xf32, #tpu.memory_space<vmem>>, vector<1x8x8xf32>,
      %c2_79 = arith.constant 2 : index
      %c0_80 = arith.constant 0 : index
      %c0_81 = arith.constant 0 : index
      %148 = vector.load %arg7[%c2_79, %c0_80, %c0_81] : memref<4x8x1xf32, #tpu.memory_space<vmem>>, vector<1x8x1xf32>
      %149 = vector.shape_cast %148 : vector<1x8x1xf32> to vector<8x1xf32>
      %150 = vector.shape_cast %124 : vector<8x1xf32> to vector<1x8x1xf32>
      tpu.vector_store %arg7[%c2_79, %c0_80, %c0_81], %150 {strides = array<i32>} : memref<4x8x1xf32, #tpu.memory_space<vmem>>, vector<1x8x1xf32>,
      %151 = vector.extract_strided_slice %15 {offsets = [0, 24], sizes = [8, 8], strides = [1, 1]} : vector<8x32xf32> to vector<8x8xf32>
      %152 = vector.extract_strided_slice %17 {offsets = [0, 24], sizes = [8, 8], strides = [1, 1]} : vector<8x32xf32> to vector<8x8xf32>
      %153 = vector.extract_strided_slice %19 {offsets = [0, 24], sizes = [8, 8], strides = [1, 1]} : vector<8x32xf32> to vector<8x8xf32>
      %cst_82 = arith.constant dense<0.000000e+00> : vector<8x8xf32>
      %154 = tpu.matmul %151, %152, %cst_82 {dimension_numbers = #tpu.dot_dimension_numbers<[1], [1], [0], [0], [0, 0, 1, 0], [], []>} : vector<8x8xf32>, vector<8x8xf32>, vector<8x8xf32> -> vector<8x8xf32>
      %cst_83 = arith.constant -1.000000e+30 : f32
      %155 = vector.broadcast %cst_83 : f32 to vector<8x8xf32>
      %156 = arith.select %39, %154, %155 : vector<8x8xi1>, vector<8x8xf32>
      %c3 = arith.constant 3 : index
      %c0_84 = arith.constant 0 : index
      %c0_85 = arith.constant 0 : index
      %157 = vector.load %arg7[%c3, %c0_84, %c0_85] : memref<4x8x1xf32, #tpu.memory_space<vmem>>, vector<1x8x1xf32>
      %158 = vector.shape_cast %157 : vector<1x8x1xf32> to vector<8x1xf32>
      %cst_86 = arith.constant dense<0xFF800000> : vector<8xf32>
      %159 = vector.multi_reduction <maximumf>, %156, %cst_86 [1] : vector<8x8xf32> to vector<8xf32>
      %160 = vector.shape_cast %159 : vector<8xf32> to vector<8x1xf32>
      %161 = arith.maximumf %158, %160 : vector<8x1xf32>
      %162 = arith.subf %158, %161 : vector<8x1xf32>
      %163 = math.exp %162 : vector<8x1xf32>
      %164 = vector.broadcast %161 : vector<8x1xf32> to vector<8x8xf32>
      %165 = arith.subf %156, %164 : vector<8x8xf32>
      %166 = math.exp %165 : vector<8x8xf32>
      %c3_87 = arith.constant 3 : index
      %c0_88 = arith.constant 0 : index
      %c0_89 = arith.constant 0 : index
      %167 = vector.load %arg8[%c3_87, %c0_88, %c0_89] : memref<4x8x1xf32, #tpu.memory_space<vmem>>, vector<1x8x1xf32>
      %168 = vector.shape_cast %167 : vector<1x8x1xf32> to vector<8x1xf32>
      %169 = arith.mulf %163, %168 : vector<8x1xf32>
      %cst_90 = arith.constant dense<0.000000e+00> : vector<8xf32>
      %170 = vector.multi_reduction <add>, %166, %cst_90 [1] : vector<8x8xf32> to vector<8xf32>
      %171 = vector.shape_cast %170 : vector<8xf32> to vector<8x1xf32>
      %172 = arith.addf %169, %171 : vector<8x1xf32>
      %c3_91 = arith.constant 3 : index
      %c0_92 = arith.constant 0 : index
      %c0_93 = arith.constant 0 : index
      %173 = vector.load %arg8[%c3_91, %c0_92, %c0_93] : memref<4x8x1xf32, #tpu.memory_space<vmem>>, vector<1x8x1xf32>
      %174 = vector.shape_cast %173 : vector<1x8x1xf32> to vector<8x1xf32>
      %175 = vector.shape_cast %172 : vector<8x1xf32> to vector<1x8x1xf32>
      tpu.vector_store %arg8[%c3_91, %c0_92, %c0_93], %175 {strides = array<i32>} : memref<4x8x1xf32, #tpu.memory_space<vmem>>, vector<1x8x1xf32>,
      %c3_94 = arith.constant 3 : index
      %c0_95 = arith.constant 0 : index
      %c0_96 = arith.constant 0 : index
      %176 = vector.load %arg9[%c3_94, %c0_95, %c0_96] : memref<4x8x8xf32, #tpu.memory_space<vmem>>, vector<1x8x8xf32>
      %177 = vector.shape_cast %176 : vector<1x8x8xf32> to vector<8x8xf32>
      %178 = vector.broadcast %163 : vector<8x1xf32> to vector<8x8xf32>
      %179 = arith.mulf %178, %177 : vector<8x8xf32>
      %cst_97 = arith.constant dense<0.000000e+00> : vector<8x8xf32>
      %180 = tpu.matmul %166, %153, %cst_97 {dimension_numbers = #tpu.dot_dimension_numbers<[1], [0], [0], [1], [0, 0, 1, 1], [], []>} : vector<8x8xf32>, vector<8x8xf32>, vector<8x8xf32> -> vector<8x8xf32>
      %181 = arith.addf %179, %180 : vector<8x8xf32>
      %c3_98 = arith.constant 3 : index
      %c0_99 = arith.constant 0 : index
      %c0_100 = arith.constant 0 : index
      %182 = vector.load %arg9[%c3_98, %c0_99, %c0_100] : memref<4x8x8xf32, #tpu.memory_space<vmem>>, vector<1x8x8xf32>
      %183 = vector.shape_cast %182 : vector<1x8x8xf32> to vector<8x8xf32>
      %184 = vector.shape_cast %181 : vector<8x8xf32> to vector<1x8x8xf32>
      tpu.vector_store %arg9[%c3_98, %c0_99, %c0_100], %184 {strides = array<i32>} : memref<4x8x8xf32, #tpu.memory_space<vmem>>, vector<1x8x8xf32>,
      %c3_101 = arith.constant 3 : index
      %c0_102 = arith.constant 0 : index
      %c0_103 = arith.constant 0 : index
      %185 = vector.load %arg7[%c3_101, %c0_102, %c0_103] : memref<4x8x1xf32, #tpu.memory_space<vmem>>, vector<1x8x1xf32>
      %186 = vector.shape_cast %185 : vector<1x8x1xf32> to vector<8x1xf32>
      %187 = vector.shape_cast %161 : vector<8x1xf32> to vector<1x8x1xf32>
      tpu.vector_store %arg7[%c3_101, %c0_102, %c0_103], %187 {strides = array<i32>} : memref<4x8x1xf32, #tpu.memory_space<vmem>>, vector<1x8x1xf32>,
    } else {
    }
    %true = arith.constant true
    %23 = arith.xori %13, %true : i1
    %24 = arith.andi %4, %23 : i1
    %25 = arith.extui %24 : i1 to i32
    %c0_i32_13 = arith.constant 0 : i32
    %26 = arith.cmpi ne, %25, %c0_i32_13 : i32
    scf.if %26 {
      %30 = vector.extract_strided_slice %15 {offsets = [0, 0], sizes = [8, 8], strides = [1, 1]} : vector<8x32xf32> to vector<8x8xf32>
      %31 = vector.extract_strided_slice %17 {offsets = [0, 0], sizes = [8, 8], strides = [1, 1]} : vector<8x32xf32> to vector<8x8xf32>
      %32 = vector.extract_strided_slice %19 {offsets = [0, 0], sizes = [8, 8], strides = [1, 1]} : vector<8x32xf32> to vector<8x8xf32>
      %cst = arith.constant dense<0.000000e+00> : vector<8x8xf32>
      %33 = tpu.matmul %30, %31, %cst {dimension_numbers = #tpu.dot_dimension_numbers<[1], [1], [0], [0], [0, 0, 1, 0], [], []>} : vector<8x8xf32>, vector<8x8xf32>, vector<8x8xf32> -> vector<8x8xf32>
      %c0_15 = arith.constant 0 : index
      %c0_16 = arith.constant 0 : index
      %c0_17 = arith.constant 0 : index
      %34 = vector.load %arg7[%c0_15, %c0_16, %c0_17] : memref<4x8x1xf32, #tpu.memory_space<vmem>>, vector<1x8x1xf32>
      %35 = vector.shape_cast %34 : vector<1x8x1xf32> to vector<8x1xf32>
      %cst_18 = arith.constant dense<0xFF800000> : vector<8xf32>
      %36 = vector.multi_reduction <maximumf>, %33, %cst_18 [1] : vector<8x8xf32> to vector<8xf32>
      %37 = vector.shape_cast %36 : vector<8xf32> to vector<8x1xf32>
      %38 = arith.maximumf %35, %37 : vector<8x1xf32>
      %39 = arith.subf %35, %38 : vector<8x1xf32>
      %40 = math.exp %39 : vector<8x1xf32>
      %41 = vector.broadcast %38 : vector<8x1xf32> to vector<8x8xf32>
      %42 = arith.subf %33, %41 : vector<8x8xf32>
      %43 = math.exp %42 : vector<8x8xf32>
      %c0_19 = arith.constant 0 : index
      %c0_20 = arith.constant 0 : index
      %c0_21 = arith.constant 0 : index
      %44 = vector.load %arg8[%c0_19, %c0_20, %c0_21] : memref<4x8x1xf32, #tpu.memory_space<vmem>>, vector<1x8x1xf32>
      %45 = vector.shape_cast %44 : vector<1x8x1xf32> to vector<8x1xf32>
      %46 = arith.mulf %40, %45 : vector<8x1xf32>
      %cst_22 = arith.constant dense<0.000000e+00> : vector<8xf32>
      %47 = vector.multi_reduction <add>, %43, %cst_22 [1] : vector<8x8xf32> to vector<8xf32>
      %48 = vector.shape_cast %47 : vector<8xf32> to vector<8x1xf32>
      %49 = arith.addf %46, %48 : vector<8x1xf32>
      %c0_23 = arith.constant 0 : index
      %c0_24 = arith.constant 0 : index
      %c0_25 = arith.constant 0 : index
      %50 = vector.load %arg8[%c0_23, %c0_24, %c0_25] : memref<4x8x1xf32, #tpu.memory_space<vmem>>, vector<1x8x1xf32>
      %51 = vector.shape_cast %50 : vector<1x8x1xf32> to vector<8x1xf32>
      %52 = vector.shape_cast %49 : vector<8x1xf32> to vector<1x8x1xf32>
      tpu.vector_store %arg8[%c0_23, %c0_24, %c0_25], %52 {strides = array<i32>} : memref<4x8x1xf32, #tpu.memory_space<vmem>>, vector<1x8x1xf32>,
      %c0_26 = arith.constant 0 : index
      %c0_27 = arith.constant 0 : index
      %c0_28 = arith.constant 0 : index
      %53 = vector.load %arg9[%c0_26, %c0_27, %c0_28] : memref<4x8x8xf32, #tpu.memory_space<vmem>>, vector<1x8x8xf32>
      %54 = vector.shape_cast %53 : vector<1x8x8xf32> to vector<8x8xf32>
      %55 = vector.broadcast %40 : vector<8x1xf32> to vector<8x8xf32>
      %56 = arith.mulf %55, %54 : vector<8x8xf32>
      %cst_29 = arith.constant dense<0.000000e+00> : vector<8x8xf32>
      %57 = tpu.matmul %43, %32, %cst_29 {dimension_numbers = #tpu.dot_dimension_numbers<[1], [0], [0], [1], [0, 0, 1, 1], [], []>} : vector<8x8xf32>, vector<8x8xf32>, vector<8x8xf32> -> vector<8x8xf32>
      %58 = arith.addf %56, %57 : vector<8x8xf32>
      %c0_30 = arith.constant 0 : index
      %c0_31 = arith.constant 0 : index
      %c0_32 = arith.constant 0 : index
      %59 = vector.load %arg9[%c0_30, %c0_31, %c0_32] : memref<4x8x8xf32, #tpu.memory_space<vmem>>, vector<1x8x8xf32>
      %60 = vector.shape_cast %59 : vector<1x8x8xf32> to vector<8x8xf32>
      %61 = vector.shape_cast %58 : vector<8x8xf32> to vector<1x8x8xf32>
      tpu.vector_store %arg9[%c0_30, %c0_31, %c0_32], %61 {strides = array<i32>} : memref<4x8x8xf32, #tpu.memory_space<vmem>>, vector<1x8x8xf32>,
      %c0_33 = arith.constant 0 : index
      %c0_34 = arith.constant 0 : index
      %c0_35 = arith.constant 0 : index
      %62 = vector.load %arg7[%c0_33, %c0_34, %c0_35] : memref<4x8x1xf32, #tpu.memory_space<vmem>>, vector<1x8x1xf32>
      %63 = vector.shape_cast %62 : vector<1x8x1xf32> to vector<8x1xf32>
      %64 = vector.shape_cast %38 : vector<8x1xf32> to vector<1x8x1xf32>
      tpu.vector_store %arg7[%c0_33, %c0_34, %c0_35], %64 {strides = array<i32>} : memref<4x8x1xf32, #tpu.memory_space<vmem>>, vector<1x8x1xf32>,
      %65 = vector.extract_strided_slice %15 {offsets = [0, 8], sizes = [8, 8], strides = [1, 1]} : vector<8x32xf32> to vector<8x8xf32>
      %66 = vector.extract_strided_slice %17 {offsets = [0, 8], sizes = [8, 8], strides = [1, 1]} : vector<8x32xf32> to vector<8x8xf32>
      %67 = vector.extract_strided_slice %19 {offsets = [0, 8], sizes = [8, 8], strides = [1, 1]} : vector<8x32xf32> to vector<8x8xf32>
      %cst_36 = arith.constant dense<0.000000e+00> : vector<8x8xf32>
      %68 = tpu.matmul %65, %66, %cst_36 {dimension_numbers = #tpu.dot_dimension_numbers<[1], [1], [0], [0], [0, 0, 1, 0], [], []>} : vector<8x8xf32>, vector<8x8xf32>, vector<8x8xf32> -> vector<8x8xf32>
      %c1 = arith.constant 1 : index
      %c0_37 = arith.constant 0 : index
      %c0_38 = arith.constant 0 : index
      %69 = vector.load %arg7[%c1, %c0_37, %c0_38] : memref<4x8x1xf32, #tpu.memory_space<vmem>>, vector<1x8x1xf32>
      %70 = vector.shape_cast %69 : vector<1x8x1xf32> to vector<8x1xf32>
      %cst_39 = arith.constant dense<0xFF800000> : vector<8xf32>
      %71 = vector.multi_reduction <maximumf>, %68, %cst_39 [1] : vector<8x8xf32> to vector<8xf32>
      %72 = vector.shape_cast %71 : vector<8xf32> to vector<8x1xf32>
      %73 = arith.maximumf %70, %72 : vector<8x1xf32>
      %74 = arith.subf %70, %73 : vector<8x1xf32>
      %75 = math.exp %74 : vector<8x1xf32>
      %76 = vector.broadcast %73 : vector<8x1xf32> to vector<8x8xf32>
      %77 = arith.subf %68, %76 : vector<8x8xf32>
      %78 = math.exp %77 : vector<8x8xf32>
      %c1_40 = arith.constant 1 : index
      %c0_41 = arith.constant 0 : index
      %c0_42 = arith.constant 0 : index
      %79 = vector.load %arg8[%c1_40, %c0_41, %c0_42] : memref<4x8x1xf32, #tpu.memory_space<vmem>>, vector<1x8x1xf32>
      %80 = vector.shape_cast %79 : vector<1x8x1xf32> to vector<8x1xf32>
      %81 = arith.mulf %75, %80 : vector<8x1xf32>
      %cst_43 = arith.constant dense<0.000000e+00> : vector<8xf32>
      %82 = vector.multi_reduction <add>, %78, %cst_43 [1] : vector<8x8xf32> to vector<8xf32>
      %83 = vector.shape_cast %82 : vector<8xf32> to vector<8x1xf32>
      %84 = arith.addf %81, %83 : vector<8x1xf32>
      %c1_44 = arith.constant 1 : index
      %c0_45 = arith.constant 0 : index
      %c0_46 = arith.constant 0 : index
      %85 = vector.load %arg8[%c1_44, %c0_45, %c0_46] : memref<4x8x1xf32, #tpu.memory_space<vmem>>, vector<1x8x1xf32>
      %86 = vector.shape_cast %85 : vector<1x8x1xf32> to vector<8x1xf32>
      %87 = vector.shape_cast %84 : vector<8x1xf32> to vector<1x8x1xf32>
      tpu.vector_store %arg8[%c1_44, %c0_45, %c0_46], %87 {strides = array<i32>} : memref<4x8x1xf32, #tpu.memory_space<vmem>>, vector<1x8x1xf32>,
      %c1_47 = arith.constant 1 : index
      %c0_48 = arith.constant 0 : index
      %c0_49 = arith.constant 0 : index
      %88 = vector.load %arg9[%c1_47, %c0_48, %c0_49] : memref<4x8x8xf32, #tpu.memory_space<vmem>>, vector<1x8x8xf32>
      %89 = vector.shape_cast %88 : vector<1x8x8xf32> to vector<8x8xf32>
      %90 = vector.broadcast %75 : vector<8x1xf32> to vector<8x8xf32>
      %91 = arith.mulf %90, %89 : vector<8x8xf32>
      %cst_50 = arith.constant dense<0.000000e+00> : vector<8x8xf32>
      %92 = tpu.matmul %78, %67, %cst_50 {dimension_numbers = #tpu.dot_dimension_numbers<[1], [0], [0], [1], [0, 0, 1, 1], [], []>} : vector<8x8xf32>, vector<8x8xf32>, vector<8x8xf32> -> vector<8x8xf32>
      %93 = arith.addf %91, %92 : vector<8x8xf32>
      %c1_51 = arith.constant 1 : index
      %c0_52 = arith.constant 0 : index
      %c0_53 = arith.constant 0 : index
      %94 = vector.load %arg9[%c1_51, %c0_52, %c0_53] : memref<4x8x8xf32, #tpu.memory_space<vmem>>, vector<1x8x8xf32>
      %95 = vector.shape_cast %94 : vector<1x8x8xf32> to vector<8x8xf32>
      %96 = vector.shape_cast %93 : vector<8x8xf32> to vector<1x8x8xf32>
      tpu.vector_store %arg9[%c1_51, %c0_52, %c0_53], %96 {strides = array<i32>} : memref<4x8x8xf32, #tpu.memory_space<vmem>>, vector<1x8x8xf32>,
      %c1_54 = arith.constant 1 : index
      %c0_55 = arith.constant 0 : index
      %c0_56 = arith.constant 0 : index
      %97 = vector.load %arg7[%c1_54, %c0_55, %c0_56] : memref<4x8x1xf32, #tpu.memory_space<vmem>>, vector<1x8x1xf32>
      %98 = vector.shape_cast %97 : vector<1x8x1xf32> to vector<8x1xf32>
      %99 = vector.shape_cast %73 : vector<8x1xf32> to vector<1x8x1xf32>
      tpu.vector_store %arg7[%c1_54, %c0_55, %c0_56], %99 {strides = array<i32>} : memref<4x8x1xf32, #tpu.memory_space<vmem>>, vector<1x8x1xf32>,
      %100 = vector.extract_strided_slice %15 {offsets = [0, 16], sizes = [8, 8], strides = [1, 1]} : vector<8x32xf32> to vector<8x8xf32>
      %101 = vector.extract_strided_slice %17 {offsets = [0, 16], sizes = [8, 8], strides = [1, 1]} : vector<8x32xf32> to vector<8x8xf32>
      %102 = vector.extract_strided_slice %19 {offsets = [0, 16], sizes = [8, 8], strides = [1, 1]} : vector<8x32xf32> to vector<8x8xf32>
      %cst_57 = arith.constant dense<0.000000e+00> : vector<8x8xf32>
      %103 = tpu.matmul %100, %101, %cst_57 {dimension_numbers = #tpu.dot_dimension_numbers<[1], [1], [0], [0], [0, 0, 1, 0], [], []>} : vector<8x8xf32>, vector<8x8xf32>, vector<8x8xf32> -> vector<8x8xf32>
      %c2 = arith.constant 2 : index
      %c0_58 = arith.constant 0 : index
      %c0_59 = arith.constant 0 : index
      %104 = vector.load %arg7[%c2, %c0_58, %c0_59] : memref<4x8x1xf32, #tpu.memory_space<vmem>>, vector<1x8x1xf32>
      %105 = vector.shape_cast %104 : vector<1x8x1xf32> to vector<8x1xf32>
      %cst_60 = arith.constant dense<0xFF800000> : vector<8xf32>
      %106 = vector.multi_reduction <maximumf>, %103, %cst_60 [1] : vector<8x8xf32> to vector<8xf32>
      %107 = vector.shape_cast %106 : vector<8xf32> to vector<8x1xf32>
      %108 = arith.maximumf %105, %107 : vector<8x1xf32>
      %109 = arith.subf %105, %108 : vector<8x1xf32>
      %110 = math.exp %109 : vector<8x1xf32>
      %111 = vector.broadcast %108 : vector<8x1xf32> to vector<8x8xf32>
      %112 = arith.subf %103, %111 : vector<8x8xf32>
      %113 = math.exp %112 : vector<8x8xf32>
      %c2_61 = arith.constant 2 : index
      %c0_62 = arith.constant 0 : index
      %c0_63 = arith.constant 0 : index
      %114 = vector.load %arg8[%c2_61, %c0_62, %c0_63] : memref<4x8x1xf32, #tpu.memory_space<vmem>>, vector<1x8x1xf32>
      %115 = vector.shape_cast %114 : vector<1x8x1xf32> to vector<8x1xf32>
      %116 = arith.mulf %110, %115 : vector<8x1xf32>
      %cst_64 = arith.constant dense<0.000000e+00> : vector<8xf32>
      %117 = vector.multi_reduction <add>, %113, %cst_64 [1] : vector<8x8xf32> to vector<8xf32>
      %118 = vector.shape_cast %117 : vector<8xf32> to vector<8x1xf32>
      %119 = arith.addf %116, %118 : vector<8x1xf32>
      %c2_65 = arith.constant 2 : index
      %c0_66 = arith.constant 0 : index
      %c0_67 = arith.constant 0 : index
      %120 = vector.load %arg8[%c2_65, %c0_66, %c0_67] : memref<4x8x1xf32, #tpu.memory_space<vmem>>, vector<1x8x1xf32>
      %121 = vector.shape_cast %120 : vector<1x8x1xf32> to vector<8x1xf32>
      %122 = vector.shape_cast %119 : vector<8x1xf32> to vector<1x8x1xf32>
      tpu.vector_store %arg8[%c2_65, %c0_66, %c0_67], %122 {strides = array<i32>} : memref<4x8x1xf32, #tpu.memory_space<vmem>>, vector<1x8x1xf32>,
      %c2_68 = arith.constant 2 : index
      %c0_69 = arith.constant 0 : index
      %c0_70 = arith.constant 0 : index
      %123 = vector.load %arg9[%c2_68, %c0_69, %c0_70] : memref<4x8x8xf32, #tpu.memory_space<vmem>>, vector<1x8x8xf32>
      %124 = vector.shape_cast %123 : vector<1x8x8xf32> to vector<8x8xf32>
      %125 = vector.broadcast %110 : vector<8x1xf32> to vector<8x8xf32>
      %126 = arith.mulf %125, %124 : vector<8x8xf32>
      %cst_71 = arith.constant dense<0.000000e+00> : vector<8x8xf32>
      %127 = tpu.matmul %113, %102, %cst_71 {dimension_numbers = #tpu.dot_dimension_numbers<[1], [0], [0], [1], [0, 0, 1, 1], [], []>} : vector<8x8xf32>, vector<8x8xf32>, vector<8x8xf32> -> vector<8x8xf32>
      %128 = arith.addf %126, %127 : vector<8x8xf32>
      %c2_72 = arith.constant 2 : index
      %c0_73 = arith.constant 0 : index
      %c0_74 = arith.constant 0 : index
      %129 = vector.load %arg9[%c2_72, %c0_73, %c0_74] : memref<4x8x8xf32, #tpu.memory_space<vmem>>, vector<1x8x8xf32>
      %130 = vector.shape_cast %129 : vector<1x8x8xf32> to vector<8x8xf32>
      %131 = vector.shape_cast %128 : vector<8x8xf32> to vector<1x8x8xf32>
      tpu.vector_store %arg9[%c2_72, %c0_73, %c0_74], %131 {strides = array<i32>} : memref<4x8x8xf32, #tpu.memory_space<vmem>>, vector<1x8x8xf32>,
      %c2_75 = arith.constant 2 : index
      %c0_76 = arith.constant 0 : index
      %c0_77 = arith.constant 0 : index
      %132 = vector.load %arg7[%c2_75, %c0_76, %c0_77] : memref<4x8x1xf32, #tpu.memory_space<vmem>>, vector<1x8x1xf32>
      %133 = vector.shape_cast %132 : vector<1x8x1xf32> to vector<8x1xf32>
      %134 = vector.shape_cast %108 : vector<8x1xf32> to vector<1x8x1xf32>
      tpu.vector_store %arg7[%c2_75, %c0_76, %c0_77], %134 {strides = array<i32>} : memref<4x8x1xf32, #tpu.memory_space<vmem>>, vector<1x8x1xf32>,
      %135 = vector.extract_strided_slice %15 {offsets = [0, 24], sizes = [8, 8], strides = [1, 1]} : vector<8x32xf32> to vector<8x8xf32>
      %136 = vector.extract_strided_slice %17 {offsets = [0, 24], sizes = [8, 8], strides = [1, 1]} : vector<8x32xf32> to vector<8x8xf32>
      %137 = vector.extract_strided_slice %19 {offsets = [0, 24], sizes = [8, 8], strides = [1, 1]} : vector<8x32xf32> to vector<8x8xf32>
      %cst_78 = arith.constant dense<0.000000e+00> : vector<8x8xf32>
      %138 = tpu.matmul %135, %136, %cst_78 {dimension_numbers = #tpu.dot_dimension_numbers<[1], [1], [0], [0], [0, 0, 1, 0], [], []>} : vector<8x8xf32>, vector<8x8xf32>, vector<8x8xf32> -> vector<8x8xf32>
      %c3 = arith.constant 3 : index
      %c0_79 = arith.constant 0 : index
      %c0_80 = arith.constant 0 : index
      %139 = vector.load %arg7[%c3, %c0_79, %c0_80] : memref<4x8x1xf32, #tpu.memory_space<vmem>>, vector<1x8x1xf32>
      %140 = vector.shape_cast %139 : vector<1x8x1xf32> to vector<8x1xf32>
      %cst_81 = arith.constant dense<0xFF800000> : vector<8xf32>
      %141 = vector.multi_reduction <maximumf>, %138, %cst_81 [1] : vector<8x8xf32> to vector<8xf32>
      %142 = vector.shape_cast %141 : vector<8xf32> to vector<8x1xf32>
      %143 = arith.maximumf %140, %142 : vector<8x1xf32>
      %144 = arith.subf %140, %143 : vector<8x1xf32>
      %145 = math.exp %144 : vector<8x1xf32>
      %146 = vector.broadcast %143 : vector<8x1xf32> to vector<8x8xf32>
      %147 = arith.subf %138, %146 : vector<8x8xf32>
      %148 = math.exp %147 : vector<8x8xf32>
      %c3_82 = arith.constant 3 : index
      %c0_83 = arith.constant 0 : index
      %c0_84 = arith.constant 0 : index
      %149 = vector.load %arg8[%c3_82, %c0_83, %c0_84] : memref<4x8x1xf32, #tpu.memory_space<vmem>>, vector<1x8x1xf32>
      %150 = vector.shape_cast %149 : vector<1x8x1xf32> to vector<8x1xf32>
      %151 = arith.mulf %145, %150 : vector<8x1xf32>
      %cst_85 = arith.constant dense<0.000000e+00> : vector<8xf32>
      %152 = vector.multi_reduction <add>, %148, %cst_85 [1] : vector<8x8xf32> to vector<8xf32>
      %153 = vector.shape_cast %152 : vector<8xf32> to vector<8x1xf32>
      %154 = arith.addf %151, %153 : vector<8x1xf32>
      %c3_86 = arith.constant 3 : index
      %c0_87 = arith.constant 0 : index
      %c0_88 = arith.constant 0 : index
      %155 = vector.load %arg8[%c3_86, %c0_87, %c0_88] : memref<4x8x1xf32, #tpu.memory_space<vmem>>, vector<1x8x1xf32>
      %156 = vector.shape_cast %155 : vector<1x8x1xf32> to vector<8x1xf32>
      %157 = vector.shape_cast %154 : vector<8x1xf32> to vector<1x8x1xf32>
      tpu.vector_store %arg8[%c3_86, %c0_87, %c0_88], %157 {strides = array<i32>} : memref<4x8x1xf32, #tpu.memory_space<vmem>>, vector<1x8x1xf32>,
      %c3_89 = arith.constant 3 : index
      %c0_90 = arith.constant 0 : index
      %c0_91 = arith.constant 0 : index
      %158 = vector.load %arg9[%c3_89, %c0_90, %c0_91] : memref<4x8x8xf32, #tpu.memory_space<vmem>>, vector<1x8x8xf32>
      %159 = vector.shape_cast %158 : vector<1x8x8xf32> to vector<8x8xf32>
      %160 = vector.broadcast %145 : vector<8x1xf32> to vector<8x8xf32>
      %161 = arith.mulf %160, %159 : vector<8x8xf32>
      %cst_92 = arith.constant dense<0.000000e+00> : vector<8x8xf32>
      %162 = tpu.matmul %148, %137, %cst_92 {dimension_numbers = #tpu.dot_dimension_numbers<[1], [0], [0], [1], [0, 0, 1, 1], [], []>} : vector<8x8xf32>, vector<8x8xf32>, vector<8x8xf32> -> vector<8x8xf32>
      %163 = arith.addf %161, %162 : vector<8x8xf32>
      %c3_93 = arith.constant 3 : index
      %c0_94 = arith.constant 0 : index
      %c0_95 = arith.constant 0 : index
      %164 = vector.load %arg9[%c3_93, %c0_94, %c0_95] : memref<4x8x8xf32, #tpu.memory_space<vmem>>, vector<1x8x8xf32>
      %165 = vector.shape_cast %164 : vector<1x8x8xf32> to vector<8x8xf32>
      %166 = vector.shape_cast %163 : vector<8x8xf32> to vector<1x8x8xf32>
      tpu.vector_store %arg9[%c3_93, %c0_94, %c0_95], %166 {strides = array<i32>} : memref<4x8x8xf32, #tpu.memory_space<vmem>>, vector<1x8x8xf32>,
      %c3_96 = arith.constant 3 : index
      %c0_97 = arith.constant 0 : index
      %c0_98 = arith.constant 0 : index
      %167 = vector.load %arg7[%c3_96, %c0_97, %c0_98] : memref<4x8x1xf32, #tpu.memory_space<vmem>>, vector<1x8x1xf32>
      %168 = vector.shape_cast %167 : vector<1x8x1xf32> to vector<8x1xf32>
      %169 = vector.shape_cast %143 : vector<8x1xf32> to vector<1x8x1xf32>
      tpu.vector_store %arg7[%c3_96, %c0_97, %c0_98], %169 {strides = array<i32>} : memref<4x8x1xf32, #tpu.memory_space<vmem>>, vector<1x8x1xf32>,
    } else {
    }
    %c2_i32 = arith.constant 2 : i32
    %27 = arith.cmpi eq, %arg2, %c2_i32 : i32
    %28 = arith.extui %27 : i1 to i32
    %c0_i32_14 = arith.constant 0 : i32
    %29 = arith.cmpi ne, %28, %c0_i32_14 : i32
    scf.if %29 {
      %c0_15 = arith.constant 0 : index
      %c0_16 = arith.constant 0 : index
      %c0_17 = arith.constant 0 : index
      %30 = vector.load %arg8[%c0_15, %c0_16, %c0_17] : memref<4x8x1xf32, #tpu.memory_space<vmem>>, vector<1x8x1xf32>
      %31 = vector.shape_cast %30 : vector<1x8x1xf32> to vector<8x1xf32>
      %32 = tpu.reciprocal %31 {approx = true} : vector<8x1xf32> -> vector<8x1xf32>
      %c0_18 = arith.constant 0 : index
      %c0_19 = arith.constant 0 : index
      %c0_20 = arith.constant 0 : index
      %33 = vector.load %arg9[%c0_18, %c0_19, %c0_20] : memref<4x8x8xf32, #tpu.memory_space<vmem>>, vector<1x8x8xf32>
      %34 = vector.shape_cast %33 : vector<1x8x8xf32> to vector<8x8xf32>
      %35 = vector.broadcast %32 : vector<8x1xf32> to vector<8x8xf32>
      %36 = arith.mulf %34, %35 : vector<8x8xf32>
      %c1 = arith.constant 1 : index
      %c0_21 = arith.constant 0 : index
      %c0_22 = arith.constant 0 : index
      %37 = vector.load %arg8[%c1, %c0_21, %c0_22] : memref<4x8x1xf32, #tpu.memory_space<vmem>>, vector<1x8x1xf32>
      %38 = vector.shape_cast %37 : vector<1x8x1xf32> to vector<8x1xf32>
      %39 = tpu.reciprocal %38 {approx = true} : vector<8x1xf32> -> vector<8x1xf32>
      %c1_23 = arith.constant 1 : index
      %c0_24 = arith.constant 0 : index
      %c0_25 = arith.constant 0 : index
      %40 = vector.load %arg9[%c1_23, %c0_24, %c0_25] : memref<4x8x8xf32, #tpu.memory_space<vmem>>, vector<1x8x8xf32>
      %41 = vector.shape_cast %40 : vector<1x8x8xf32> to vector<8x8xf32>
      %42 = vector.broadcast %39 : vector<8x1xf32> to vector<8x8xf32>
      %43 = arith.mulf %41, %42 : vector<8x8xf32>
      %c2 = arith.constant 2 : index
      %c0_26 = arith.constant 0 : index
      %c0_27 = arith.constant 0 : index
      %44 = vector.load %arg8[%c2, %c0_26, %c0_27] : memref<4x8x1xf32, #tpu.memory_space<vmem>>, vector<1x8x1xf32>
      %45 = vector.shape_cast %44 : vector<1x8x1xf32> to vector<8x1xf32>
      %46 = tpu.reciprocal %45 {approx = true} : vector<8x1xf32> -> vector<8x1xf32>
      %c2_28 = arith.constant 2 : index
      %c0_29 = arith.constant 0 : index
      %c0_30 = arith.constant 0 : index
      %47 = vector.load %arg9[%c2_28, %c0_29, %c0_30] : memref<4x8x8xf32, #tpu.memory_space<vmem>>, vector<1x8x8xf32>
      %48 = vector.shape_cast %47 : vector<1x8x8xf32> to vector<8x8xf32>
      %49 = vector.broadcast %46 : vector<8x1xf32> to vector<8x8xf32>
      %50 = arith.mulf %48, %49 : vector<8x8xf32>
      %c3 = arith.constant 3 : index
      %c0_31 = arith.constant 0 : index
      %c0_32 = arith.constant 0 : index
      %51 = vector.load %arg8[%c3, %c0_31, %c0_32] : memref<4x8x1xf32, #tpu.memory_space<vmem>>, vector<1x8x1xf32>
      %52 = vector.shape_cast %51 : vector<1x8x1xf32> to vector<8x1xf32>
      %53 = tpu.reciprocal %52 {approx = true} : vector<8x1xf32> -> vector<8x1xf32>
      %c3_33 = arith.constant 3 : index
      %c0_34 = arith.constant 0 : index
      %c0_35 = arith.constant 0 : index
      %54 = vector.load %arg9[%c3_33, %c0_34, %c0_35] : memref<4x8x8xf32, #tpu.memory_space<vmem>>, vector<1x8x8xf32>
      %55 = vector.shape_cast %54 : vector<1x8x8xf32> to vector<8x8xf32>
      %56 = vector.broadcast %53 : vector<8x1xf32> to vector<8x8xf32>
      %57 = arith.mulf %55, %56 : vector<8x8xf32>
      %58 = tpu.concatenate %36, %43, %50, %57 in 1 : vector<8x8xf32>, vector<8x8xf32>, vector<8x8xf32>, vector<8x8xf32> -> vector<8x32xf32>
      %c0_36 = arith.constant 0 : index
      %c0_37 = arith.constant 0 : index
      %c0_38 = arith.constant 0 : index
      %59 = vector.load %arg6[%c0_36, %c0_37, %c0_38] : memref<1x8x32xf32, #tpu.memory_space<vmem>>, vector<1x8x32xf32>
      %60 = vector.shape_cast %59 : vector<1x8x32xf32> to vector<8x32xf32>
      %61 = vector.shape_cast %58 : vector<8x32xf32> to vector<1x8x32xf32>
      tpu.vector_store %arg6[%c0_36, %c0_37, %c0_38], %61 {strides = array<i32>} : memref<1x8x32xf32, #tpu.memory_space<vmem>>, vector<1x8x32xf32>,
    } else {
    }
    return
  }
  func.func @transform_0(%arg0: i32, %arg1: i32, %arg2: i32) -> (i32, i32, i32) {
    %c0_i32 = arith.constant 0 : i32
    %c0_i32_0 = arith.constant 0 : i32
    return %arg0, %arg1, %c0_i32 : i32, i32, i32
  }
  func.func @transform_1(%arg0: i32, %arg1: i32, %arg2: i32) -> (i32, i32, i32) {
    %c-1_i32 = arith.constant -1 : i32
    %0 = arith.addi %arg1, %c-1_i32 : i32
    %1 = arith.addi %0, %arg2 : i32
    %c3_i32 = arith.constant 3 : i32
    %2 = arith.minsi %1, %c3_i32 : i32
    %c0_i32 = arith.constant 0 : i32
    %3 = arith.maxsi %c0_i32, %2 : i32
    %c0_i32_0 = arith.constant 0 : i32
    %c0_i32_1 = arith.constant 0 : i32
    return %arg0, %3, %c0_i32_0 : i32, i32, i32
  }
  func.func @transform_2(%arg0: i32, %arg1: i32, %arg2: i32) -> (i32, i32, i32) {
    %c-1_i32 = arith.constant -1 : i32
    %0 = arith.addi %arg1, %c-1_i32 : i32
    %1 = arith.addi %0, %arg2 : i32
    %c3_i32 = arith.constant 3 : i32
    %2 = arith.minsi %1, %c3_i32 : i32
    %c0_i32 = arith.constant 0 : i32
    %3 = arith.maxsi %c0_i32, %2 : i32
    %c0_i32_0 = arith.constant 0 : i32
    %c0_i32_1 = arith.constant 0 : i32
    return %arg0, %3, %c0_i32_0 : i32, i32, i32
  }
  func.func @transform_3(%arg0: i32, %arg1: i32, %arg2: i32) -> (i32, i32, i32) {
    %c0_i32 = arith.constant 0 : i32
    %c0_i32_0 = arith.constant 0 : i32
    return %arg0, %arg1, %c0_i32 : i32, i32, i32
  }
}

</mosaic_0001>

<bundles_post_ra>
// kernel: tpu_custom_call.1
= control target key start
LH: loop header
LB: loop body
LE: loop exit
PB: predicated region body
PF: predicated region fallthrough
CT: control target
= control target key end

     0   :  { %s2359_s0 = inlined_call_operand.hbm [shape: f32[2,32,32], index: 0, kind: input, shape index: {}]   ;;  %s2360_s1 = inlined_call_operand.hbm [shape: f32[2,32,32], index: 1, kind: input, shape index: {}]   ;;  %s2361_s2 = inlined_call_operand.hbm [shape: f32[2,32,32], index: 2, kind: input, shape index: {}]   ;;  %s2362_s3 = inlined_call_operand.hbm [shape: f32[2,32,32], index: 3, kind: output, shape index: {}]  }
   0x1   :  { %2375 = sst [smem:[#allocation28_spill]] %s2360_s1 }
   0x2   :  { %2376 = sst [smem:[#allocation29_spill]] %s2362_s3 }
   0x3   :  { %8 = vsyncpa [#allocation6], 0 }
   0x4   :  { %10 = vsyncpa [#allocation6 + $0x1], 0 }
   0x5   :  { %11 = vsyncpa [#allocation9], 0 }
   0x6   :  { %13 = vsyncpa [#allocation9 + $0x1], 0 }
   0x7   :  { %14 = vsyncpa [#allocation7], 0 }
   0x8   :  { %16 = vsyncpa [#allocation7 + $0x1], 0  ;;  %s1886_s12 = smov 0   ;;  %s1888_s13 = smov 0  }
   0x9   :  { %s1890_s14 = smov 0   ;;  %s1892_s15 = smov 0  }
   0xa   :  { %s1894_s16 = smov 0   ;;  %s1896_s17 = smov 0  }
   0xb   :  { %s1898_s18 = smov 0   ;;  %s1900_s19 = smov 0  }
   0xc   :  { %s1902_s20 = smov 0   ;;  %s1904_s21 = smov 0  }
   0xd   :  { %s1906_s22 = smov 0   ;;  %s1908_s23 = smov 0  }
   0xe   :  { %s1910_s24 = smov 0  }
   0xf LB: > { %2377 = sst [smem:[#allocation15_spill]] %s1810_s14  ;;  %s1952_s25 = sadd.s32 4294967295, %s1850_s24   ;;  %s1850_s24 = sphi %s1910_s24, %s22_s24   ;;  %s1846_s23 = sphi %s1908_s23, %s2419_s23   ;;  %s1842_s22 = sphi %s1906_s22, %s2425_s22   ;;  %s1838_s21 = sphi %s1904_s21, %s2417_s21   ;;  %s1834_s20 = sphi %s1902_s20, %s2416_s20   ;;  %s1830_s19 = sphi %s1900_s19, %s2424_s19   ;;  %s1826_s18 = sphi %s1898_s18, %s2415_s18   ;;  %s1822_s17 = sphi %s1896_s17, %s2414_s17   ;;  %s1818_s16 = sphi %s1894_s16, %s2423_s16   ;;  %s1814_s15 = sphi %s1892_s15, %s2422_s15   ;;  %s1810_s14 = sphi %s1890_s14, %s2412_s14   ;;  %s1806_s13 = sphi %s1888_s13, %s2421_s13   ;;  %s1802_s12 = sphi %s1886_s12, %s2420_s12  }
  0x10   : > { %2378 = sst [smem:[#allocation16_spill]] %s1822_s17  ;;  %s34_s26 = sadd.s32 1, %s1838_s21 }
  0x11   : > { %2379 = sst [smem:[#allocation17_spill]] %s1826_s18  ;;  %p35_p0 = scmp.ge.s32.totalorder %s34_s26, 3 }
  0x12   : > { %2380 = sst [smem:[#allocation18_spill]] %s1830_s19  ;;  %s37_s27 = sadd.s32 1, %s1842_s22 }
  0x13   : > { %2381 = sst [smem:[#allocation19_spill]] %s1834_s20  ;;  %s41_s28 = sadd.s32 1, %s1846_s23 }
  0x14   : > { %2382 = sst [smem:[#allocation20_spill]] %s1838_s21  ;;  %p58_p1 = scmp.eq.s32.totalorder %s1850_s24, 0 }
  0x15   : > { %2383 = sst [smem:[#allocation21_spill]] %s1846_s23  ;;  %s2427_s26 = smov (%p35_p0, %s34_s26), 0 }
  0x16   : > { %2384 = sst [smem:[#allocation22_spill]] %s2427_s26  ;;  %s2429_s27 = smov (!%p35_p0, %s37_s27), %s1842_s22 }
  0x17   : > { %p64_p2 = scmp.eq.s32.totalorder %s1952_s25, 0  ;;  %s73_s29 = sadd.s32 4294967295, %s1842_s22 }
  0x18   : > { %p39_p3 = scmp.ge.s32.totalorder %s2429_s27, 4  ;;  %s74_s30 = sadd.s32 %s1838_s21, %s73_s29 }
  0x19   : > { %p75_p4 = scmp.lt.s32.totalorder %s74_s30, 3  ;;  %p1337_p5 = scmp.gt.s32.totalorder %s74_s30, 0 }
  0x1a   : > { %s2431_s27 = smov (%p39_p3, %s2429_s27), 0  ;;  %s2433_s28 = smov (!%p39_p3, %s41_s28), %s1846_s23 }
  0x1b   : > { %2385 = sst [smem:[#allocation23_spill]] %s2431_s27  ;;  %s46_s4 = ssub.s32 %s1842_s22, %s2431_s27 }
  0x1c   : > { %s79_s5 = sadd.s32 4294967295, %s2431_s27  ;;  %p43_p6 = scmp.ge.s32.totalorder %s2433_s28, 2 }
  0x1d   : > { %s80_s6 = sadd.s32 %s79_s5, %s2427_s26  ;;  %s2435_s30 = smov (!%p75_p4, %s74_s30), 3 }
  0x1e   : > { %s2437_s28 = smov (%p43_p6, %s2433_s28), 0  ;;  %s2439_s30 = smov (!%p1337_p5, %s2435_s30), 0 }
  0x1f   : > { %2386 = sst [smem:[#allocation24_spill]] %s2437_s28  ;;  %s45_s7 = ssub.s32 %s1846_s23, %s2437_s28 }
  0x20   : > { %p81_p7 = scmp.lt.s32.totalorder %s80_s6, 3  ;;  %s1975_s8 = sor.u32 %s46_s4, %s45_s7 }
  0x21   : > { %p1342_p8 = scmp.gt.s32.totalorder %s80_s6, 0  ;;  %p48_p9 = scmp.eq.s32.totalorder %s1975_s8, 0 }
  0x22   : > { %s90_s9 = sadd.s32 1, %s1810_s14  ;;  %s2441_s6 = smov (!%p81_p7, %s80_s6), 3 }
  0x23   : > { %p97_p10 = scmp.ne.s32.totalorder %s1810_s14, %s1806_s13  ;;  %p103_p11 = scmp.ne.s32.totalorder %s1806_s13, %s1802_s12 }
  0x24   : > { %s2443_s6 = smov (!%p1342_p8, %s2441_s6), 0  ;;  %p1450_p0 = scmp.lt.s32.totalorder %s1850_s24, 24 }
  0x25   : > { %p1985_p12 = por %p97_p10, %p58_p1  ;;  %p1991_p13 = por %p103_p11, %p64_p2 }
  0x26   : > { %s86_s29 = ssub.s32 %s2439_s30, %s2443_s6  ;;  %s1360_s5 = sshll.u32 %s1846_s23, 2 }
  0x27   : > { %s2388_s11 = scalar_select %p1991_p13, 1, 0 }
  0x28   : > { %s87_s4 = sor.u32 %s86_s29, %s45_s7  ;;  %s216_s28 = sand.u32 1, %s1850_s24  }
  0x29   : > { %2389 = sst [smem:[#allocation25_spill]] %s2388_s11  ;;  %p88_p3 = scmp.eq.s32.totalorder %s87_s4, 0 }
  0x2a   : > { %s218_s12 = sand.u32 1, %s1810_s14   ;;  %s230_s21 = sadd.s32 %s2439_s30, %s1360_s5 }
  0x2b   : > { %s2000_s27 = scalar_select %p88_p3, %s1810_s14, %s90_s9  }
  0x2c   : > { %s2002_s26 = sshll.u32 %s218_s12, 3  ;;  %s1369_s3 = sshll.u32 %s230_s21, 3 }
  0x2d   : > { %2390 = sst [smem:[#allocation26_spill]] %s2000_s27  ;;  %s220_s20 = scalar_lea.vmem [#allocation8], %s2002_s26 }
  0x2e   : > { %s236_s18 = sshll.u32 %s220_s20, 4  ;;  %s2391_s1 = sld [smem:[#allocation28_spill]]  ;;  %s237_s18 = int_to_ptr.vmem [resolvable:$true] %s236_s18 }
  0x2f   : > { %p2014_p4 = pnand %p1450_p0, %p1985_p12  ;;  %s2021_s21 = scalar_lea.hbm %s2361_s2, %s1369_s3 }
  0x30   : > { %s2023_s20 = scalar_lea.sflag [#allocation9], %s216_s28 }
  0x31   : > { %p2371_p6 = pneg %p2014_p4 }
  0x34   : > { %s232_s11 = scalar_lea.hbm %s2391_s1, %s1369_s3  ;;  %s1625_s12 = scalar_lea.hbm %s2391_s1, 64 }
  0x35   : > { %s234_s7 = sshll.u32 %s232_s11, 4  ;;  %s235_s7 = int_to_ptr.hbm [resolvable:$true] %s234_s7 }
  0x36   : > { %s1618_s19 = sshra.s32 %s235_s7, 4  ;;  %s1619_s19 = int_to_ptr.hbm [resolvable:$true] %s1618_s19 }
  0x37   : > { %s1620_s4 = scalar_lea.hbm %s1619_s19, 8  ;;  %p1626_p10 = scmp.lt.s32.totalorder %s1619_s19, %s2391_s1 }
  0x38   : > { %p1621_p5 = scmp.ne.s32.totalorder %s1619_s19, %s1620_s4  ;;  %p1627_p11 = scmp.lt.s32.totalorder %s1625_s12, %s1620_s4 }
  0x3a   : > { %p1623_p7 = pnand %p2371_p6, %p1621_p5  ;;  %p1628_p12 = por %p1627_p11, %p1626_p10 }
  0x3c   : > { %p1624_p8 = pneg %p1623_p7 }
  0x3e   : > { %p1629_p3 = pnand %p1628_p12, %p1624_p8 }
  0x40   : > { %1632 = shalt.err (!%p1629_p3)
}
  0x41   : > { %1442 = dma.hbm_to_vmem [thread:$0]  (!%p2014_p4), %s235_s7, 128, %s237_s18, %s2023_s20  }
  0x42   : > { %p1378_p5 = scmp.ge.s32.totalorder %s1850_s24, 1  ;;  %p268_p7 = scmp.lt.s32.totalorder %s1850_s24, 25 }
  0x43   : > { %s1336_s28 = sadd.s32 4294967294, %s1850_s24   ;;  %s50_s30 = sadd.s32 1, %s1822_s17 }
  0x44   : > { %p2041_p8 = pnand %p1378_p5, %p268_p7  ;;  %p57_p10 = scmp.ne.s32.totalorder %s1822_s17, %s1818_s16 }
  0x45   : > { %s2052_s19 = scalar_select %p48_p9, %s1822_s17, %s50_s30  }
  0x46   : > { %p2056_p11 = por %p58_p1, %p57_p10  ;;  %p63_p12 = scmp.ne.s32.totalorder %s1818_s16, %s1814_s15 }
  0x47   : > { %2394 = sst [smem:[#allocation27_spill]] %s2052_s19  ;;  %p169_p3 = scmp.eq.s32.totalorder %s1952_s25, 23 }
  0x48   : > { %p175_p5 = scmp.eq.s32.totalorder %s1336_s28, 23  ;;  %p2065_p7 = por %p64_p2, %p63_p12 }
  0x49   : > { %s195_s7 = sand.u32 1, %s1822_s17   ;;  %p2070_p6 = por %p169_p3, %p57_p10 }
  0x4a   : > { %p2074_p1 = por %p175_p5, %p63_p12  ;;  %s1359_s11 = sshll.u32 %s195_s7, 3 }
  0x4b   : > { %s203_s12 = sadd.s32 %s1842_s22, %s1360_s5  ;;  %s199_s9 = scalar_lea.vmem [#allocation5], %s1359_s11 }
  0x4c   : > { %s1361_s6 = sshll.u32 %s203_s12, 3  ;;  %s209_s28 = sshll.u32 %s199_s9, 4  ;;  %s210_s28 = int_to_ptr.vmem [resolvable:$true] %s209_s28 }
  0x4d   : > { %s205_s19 = scalar_lea.hbm %s2359_s0, %s1361_s6  ;;  %p1437_p2 = pnand %p1450_p0, %p2056_p11 }
  0x4e   : > { %s207_s17 = sshll.u32 %s205_s19, 4  ;;  %s261_s27 = sshll.u32 %s2021_s21, 4  ;;  %s208_s17 = int_to_ptr.hbm [resolvable:$true] %s207_s17  ;;  %s262_s27 = int_to_ptr.hbm [resolvable:$true] %s261_s27 }
  0x4f   : > { %s196_s14 = scalar_lea.sflag [#allocation6], %s195_s7  ;;  %s247_s23 = scalar_lea.vmem [#allocation10], %s2002_s26 }
  0x50   : > { %1439 = dma.hbm_to_vmem [thread:$0]  (!%p1437_p2), %s208_s17, 128, %s210_s28, %s196_s14  }
  0x51   : > { %s263_s5 = sshll.u32 %s247_s23, 4  ;;  %s1678_s11 = sshra.s32 %s262_s27, 4  ;;  %s264_s5 = int_to_ptr.vmem [resolvable:$true] %s263_s5  ;;  %s1679_s11 = int_to_ptr.hbm [resolvable:$true] %s1678_s11 }
  0x52   : > { %s1680_s12 = scalar_lea.hbm %s1679_s11, 8  ;;  %p2399_p10 = pneg %p2014_p4 }
  0x53   : > { %p1681_p9 = scmp.ne.s32.totalorder %s1679_s11, %s1680_s12  ;;  %s1685_s4 = scalar_lea.hbm %s2361_s2, 64 }
  0x54   : > { %p1686_p0 = scmp.lt.s32.totalorder %s1679_s11, %s2361_s2  ;;  %p1687_p11 = scmp.lt.s32.totalorder %s1685_s4, %s1680_s12 }
  0x55   : > { %p1683_p12 = pnand %p1681_p9, %p2399_p10 }
  0x56   : > { %p1688_p5 = por %p1687_p11, %p1686_p0 }
  0x57   : > { %p1684_p3 = pneg %p1683_p12 }
  0x59   : > { %p1689_p2 = pnand %p1688_p5, %p1684_p3 }
  0x5b   : > { %1692 = shalt.err (!%p1689_p2)
}
  0x5c   : > { %1445 = dma.hbm_to_vmem [thread:$0]  (!%p2014_p4), %s262_s27, 128, %s264_s5, %s2023_s20  }
  0x5d   : > { %272 = sbr.rel (%p2041_p8) target bundleno = 2216 (0x8a8), region = 32  ;;  %s2105_s14 = sand.u32 (!%p2041_p8), 1, %s1818_s16  }
  0x5e   : > { %s1379_s17 = sshll.u32 (!%p2041_p8), %s2105_s14, 3  ;;  %s275_s23 = scalar_lea.sflag (!%p2041_p8), [#allocation6], %s2105_s14 }
  0x5f   : > { %s2109_s26 = scalar_lea.vmem (!%p2041_p8), [#allocation5], %s1379_s17 }
  0x62   : > { %1789 = dma.done.wait (%p2065_p7), %s275_s23, 128  }
  0x63   : > { %1791 = vsyncadd (%p2065_p7), %s275_s23, 4294967168  ;;  %s284_s29 = sand.u32 1, %s1952_s25   ;;  %s286_s20 = sand.u32 1, %s1806_s13  }
  0x64   : > { %s2117_s3 = sshll.u32 %s286_s20, 3  ;;  %s285_s7 = scalar_lea.sflag [#allocation9], %s284_s29 }
  0x65   : > { %s288_s9 = scalar_lea.vmem [#allocation8], %s2117_s3 }
  0x66   : > { %1793 = dma.done.wait (%p1991_p13), %s285_s7, 256  }
  0x67   : > { %1795 = vsyncadd (%p1991_p13), %s285_s7, 4294967040  ;;  %s2401_s28 = sld [smem:[#allocation18_spill]]  ;;  %s298_s11 = scalar_lea.vmem [#allocation10], %s2117_s3 }
  0x68   : > { %s2402_s30 = sld [smem:[#allocation17_spill]]  ;;  %s2137_s12 = scalar_lea.vmem [#allocation11], %s1379_s17 }
  0x6d   : > { %s344_s18 = sadd.s32 4294967295, %s2401_s28 }
  0x6e   : > { %s2126_s5 = sadd.s32 %s2402_s30, %s344_s18  ;;  %p1383_p13 = scmp.ne.s32.totalorder %s2402_s30, 0 }
  0x6f   : > { %p346_p4 = scmp.ge.s32.totalorder %s2126_s5, 0  ;;  %p347_p8 = scmp.lt.s32.totalorder %s2126_s5, 4 }
  0x70   : > { %353 = sbr.rel (%p1383_p13) target bundleno = 130 (0x82), region = 48 }
  0x71   : > { %p2130_p7 = pnand %p347_p8, %p346_p4 }
  0x73   : > { %p349_p9 = pneg %p2130_p7 }
  0x75   : > { %vm354_vm0 = vcmask 7168   ;;  %v1852_v0 = vmov -inf   ;;  %v1853_v1 = vmov 0.0   ;;  %vm363_vm1 = vcmask 64512  }
  0x76   : > { %355 = vst.msk [vmem:[#allocation2] sm:$0xff] %vm354_vm0, %v1852_v0 }
  0x77   : > { %356 = vst.msk [vmem:[#allocation2 + $0x8] sm:$0xff] %vm354_vm0, %v1852_v0 }
  0x78   : > { %357 = vst.msk [vmem:[#allocation2 + $0x10] sm:$0xff] %vm354_vm0, %v1852_v0 }
  0x79   : > { %358 = vst.msk [vmem:[#allocation2 + $0x18] sm:$0xff] %vm354_vm0, %v1852_v0 }
  0x7a   : > { %359 = vst.msk [vmem:[#allocation3] sm:$0xff] %vm354_vm0, %v1853_v1 }
  0x7b   : > { %360 = vst.msk [vmem:[#allocation3 + $0x8] sm:$0xff] %vm354_vm0, %v1853_v1 }
  0x7c   : > { %361 = vst.msk [vmem:[#allocation3 + $0x10] sm:$0xff] %vm354_vm0, %v1853_v1 }
  0x7d   : > { %362 = vst.msk [vmem:[#allocation3 + $0x18] sm:$0xff] %vm354_vm0, %v1853_v1 }
  0x7e   : > { %364 = vst.msk [vmem:[#allocation4] sm:$0xff] %vm363_vm1, %v1853_v1 }
  0x7f   : > { %365 = vst.msk [vmem:[#allocation4 + $0x8] sm:$0xff] %vm363_vm1, %v1853_v1 }
  0x80   : > { %366 = vst.msk [vmem:[#allocation4 + $0x10] sm:$0xff] %vm363_vm1, %v1853_v1 }
  0x81   : > { %367 = vst.msk [vmem:[#allocation4 + $0x18] sm:$0xff] %vm363_vm1, %v1853_v1 }
  0x82 PF: > { %s2404_s1 = sld [smem:[#allocation18_spill]]  ;;  %s1385_s4 = sshll.u32 %s2126_s5, 3  ;;  %v2143_v2 = vld [vmem:[%s2109_s26] sm:$0xff]  ;;  %v2147_v3 = vld [vmem:[%s288_s9] sm:$0xff] }
  0x83   : > { %v2149_v4 = vld [vmem:[%s298_s11] sm:$0xff] }
  0x88   : > { %s1384_s19 = sshll.u32 %s2404_s1, 3 }
  0x89   : > { %s370_s6 = ssub.s32 %s1385_s4, %s1384_s19 }
  0x8a   : > { %p371_p10 = scmp.lt.s32.totalorder %s370_s6, 4294967295  ;;  %p372_p12 = scmp.gt.s32.totalorder %s370_s6, 1 }
  0x8c   : > { %p2151_p3 = por %p372_p12, %p371_p10 }
  0x8e   : > { %p377_p0 = pnand %p2151_p3, %p349_p9 }
  0x8f   : > { %s1854_s17 = smov (!%p377_p0), 120   ;;  %s1855_s23 = smov (!%p377_p0), 112  }
  0x90   : > { %380 = sbr.rel (%p377_p0) target bundleno = 1040 (0x410), region = 52  ;;  %s1856_s26 = smov (!%p377_p0), 104  }
  0x95   : > { %vm394_vm2 = vcmask 64512   ;;  %471 = vmatpush.msra.mxu1 %v2149_v4  ;;  %481 = vrot.lane.b32.xlu1 %v2147_v3, %s1854_s17  ;;  %v381_v5 = vlaneseq  ;;  %v383_v8 = vstv %s1384_s19  ;;  %v387_v9 = vstv %s1385_s4  ;;  %v422_v24 = vld [vmem:[#allocation2] sm:$0xff]  ;;  %v509_v39 = vld [vmem:[#allocation2 + $0x8] sm:$0xff]  ;;  %v692_v44 = vld [vmem:[#allocation2 + $0x18] sm:$0xff] }
  0x96   : > { %1386 = vmatpush.xpose.msk.msra.mxu0 %vm394_vm2, %v2147_v3  ;;  %573 = vrot.lane.b32.xlu2 %v2147_v3, %s1855_s23  ;;  %v1857_v18 = vmov 0   ;;  %vm444_vm5 = vcmask 7168   ;;  %v601_v56 = vld [vmem:[#allocation2 + $0x10] sm:$0xff] }
  0x97   : > { %v382_v6 = vshrl.u32 %v381_v5, 7  ;;  %v386_v7 = vand.u32 127, %v381_v5  ;;  %1570 = vset.pattern.permute.xlu0 %v1857_v18  ;;  %1571 = vset.pattern.permute.xlu2 %v1857_v18 }
  0x98   : > { %1572 = vset.pattern.permute.xlu1 %v1857_v18 }
  0x99   : > { %1387 = vmatmul.msk.f32.vlgmr.msra.gmra.mxu0 %vm394_vm2, %v2143_v2  ;;  %v384_v10 = vadd.s32 %v383_v8, %v382_v6  ;;  %v388_v11 = vadd.s32 %v387_v9, %v386_v7 }
  0x9b   : > { %v389_v12 = vsub.s32 %v384_v10, %v388_v11  ;;  %v446_v10 = vld [vmem:[#allocation4] sm:$0xff] }
  0x9d   : > { %479 = vrot.lane.b32.xlu1 %v2143_v2, %s1854_s17  ;;  %v391_v13 = vsub.s32 0, %v389_v12  ;;  %vm390_vm3 = vcmp.lt.s32.totalorder %v389_v12, 0 }
  0x9e   : > { %664 = vrot.lane.b32.xlu2 %v2147_v3, %s1856_s26 }
  0x9f   : > { %v392_v14 = vsel %vm390_vm3, %v391_v13, %v389_v12 }
  0xa0   : > { %vm393_vm4 = vcmp.le.s32.totalorder %v392_v14, 8 }
  0xa5   : > { %571 = vrot.lane.b32.xlu1 %v2143_v2, %s1855_s23 }
  0xa6   : > { %662 = vrot.lane.b32.xlu2 %v2143_v2, %s1856_s26 }
  0xf0   : > { %v574_v20 = vpop.permute.xlu2 %573 }
  0xf1   : > { %1392 = vmatpush.xpose.msk.msrb.mxu1 %vm394_vm2, %v574_v20 }
  0xf8   : > { %v665_v22 = vpop.permute.xlu2 %664 }
  0xf9   : > { %1395 = vmatpush.xpose.msk.msrb.mxu0 %vm394_vm2, %v665_v22 }
 0x100   : > { %v663_v23 = vpop.permute.xlu2 %662 }
 0x101   : > { %1396 = vmatmul.msk.f32.vlgmr.msrb.gmra.mxu0 %vm394_vm2, %v663_v23 }
 0x107   : > { %v482_v19 = vpop.permute.xlu1 %481 }
 0x108   : > { %1389 = vmatpush.xpose.msk.msra.mxu2 %vm394_vm2, %v482_v19 }
 0x10f   : > { %v480_v21 = vpop.permute.xlu1 %479 }
 0x110   : > { %1390 = vmatmul.msk.f32.vlgmr.msra.gmra.mxu2 %vm394_vm2, %v480_v21 }
 0x116   : > { %v418_v15 = vpop.f32.mrf.mxu0 }
 0x117   : > { %v421_v16 = vsel %vm393_vm4, %v418_v15, -1e+30  ;;  %v572_v38 = vpop.permute.xlu1 %571 }
 0x118   : > { %v423_v17 = vsel %vm394_vm2, %v421_v16, -inf }
 0x119   : > { %424 = vmax.xlane.f32.xlu0 %v423_v17 }
 0x17e   : > { %v687_v32 = vpop.f32.mrf.mxu0 }
 0x17f   : > { %v690_v34 = vsel %vm393_vm4, %v687_v32, -1e+30 }
 0x180   : > { %v693_v35 = vsel %vm394_vm2, %v690_v34, -inf }
 0x18c   : > { %v425_v25 = vpop.xlane.xlu0 %424 }
 0x18d   : > { %v426_v26 = vmax.f32 %v422_v24, %v425_v25  ;;  %v526_v25 = vld [vmem:[#allocation3 + $0x8] sm:$0xff] }
 0x18f   : > { %v427_v27 = vsub.f32 %v422_v24, %v426_v26  ;;  %478 = vst.msk [vmem:[#allocation2] sm:$0xff] %vm444_vm5, %v426_v26  ;;  %432 = vperm.xlu0 %1570, %v426_v26  }
 0x191   : > { %v428_v51 = vmul.f32 1.442695, %v427_v27 }
 0x193   : > { %v504_v28 = vpop.f32.mrf.mxu2 }
 0x194   : > { %v507_v29 = vsel %vm393_vm4, %v504_v28, -1e+30 }
 0x195   : > { %v510_v31 = vsel %vm394_vm2, %v507_v29, -inf }
 0x196   : > { %511 = vmax.xlane.f32.xlu1 %v510_v31 }
 0x1b9   : > { %694 = vmax.xlane.f32.xlu0 %v693_v35 }
 0x1cd   : > { %542 = vrot.lane.b32.xlu0 %v2149_v4, %s1854_s17 }
 0x201   : > { %v433_v30 = vpop.permute.xlu0 %432 }
 0x202   : > { %v435_v33 = vsub.f32 %v421_v16, %v433_v30 }
 0x204   : > { %v436_v36 = vmul.f32 1.442695, %v435_v33  ;;  %v534_v33 = vld [vmem:[#allocation4 + $0x8] sm:$0xff] }
 0x206   : > { %1573 = vpow2.f32 %v436_v36 }
 0x207   : > { %1575 = vpow2.f32 %v428_v51  ;;  %v626_v51 = vld [vmem:[#allocation4 + $0x10] sm:$0xff] }
 0x209   : > { %v512_v40 = vpop.xlane.xlu1 %511 }
 0x20a   : > { %v513_v41 = vmax.f32 %v509_v39, %v512_v40 }
 0x20c   : > { %v2189_v37 = vpop.eup %1573  ;;  %v514_v42 = vsub.f32 %v509_v39, %v513_v41  ;;  %570 = vst.msk [vmem:[#allocation2 + $0x8] sm:$0xff] %vm444_vm5, %v513_v41 }
 0x20d   : > { %1388 = vmatmul.msk.f32.vlgmr.msra.gmra.mxu1 %vm394_vm2, %v2189_v37  ;;  %v2202_v53 = vpop.eup %1575  ;;  %v440_v16 = vsel %vm394_vm2, %v2189_v37, 0.0 }
 0x20e   : > { %v515_v52 = vmul.f32 1.442695, %v514_v42 }
 0x210   : > { %1577 = vpow2.f32 %v515_v52 }
 0x215   : > { %1393 = vmatmul.msk.f32.vlgmr.msrb.gmra.mxu1 %vm394_vm2, %v572_v38  ;;  %v717_v38 = vld [vmem:[#allocation4 + $0x18] sm:$0xff] }
 0x216   : > { %v1578_v54 = vpop.eup %1577 }
 0x217   : > { %v527_v26 = vmul.f32 %v1578_v54, %v526_v25 }
 0x22c   : > { %v695_v45 = vpop.xlane.xlu0 %694 }
 0x22d   : > { %v696_v46 = vmax.f32 %v692_v44, %v695_v45 }
 0x22f   : > { %v697_v47 = vsub.f32 %v692_v44, %v696_v46  ;;  %752 = vst.msk [vmem:[#allocation2 + $0x18] sm:$0xff] %vm444_vm5, %v696_v46 }
 0x231   : > { %v698_v14 = vmul.f32 1.442695, %v697_v47  ;;  %v618_v47 = vld [vmem:[#allocation3 + $0x10] sm:$0xff] }
 0x23f   : > { %v543_v55 = vpop.permute.xlu0 %542 }
 0x240   : > { %563 = vmatpush.msra.mxu3 %v543_v55 }
 0x28a   : > { %v473_v43 = vpop.f32.mrf.mxu1 }
 0x292   : > { %v596_v48 = vpop.f32.mrf.mxu1 }
 0x293   : > { %v599_v49 = vsel %vm393_vm4, %v596_v48, -1e+30 }
 0x294   : > { %v602_v50 = vsel %vm394_vm2, %v599_v49, -inf }
 0x295   : > { %603 = vmax.xlane.f32.xlu2 %v602_v50 }
 0x2ad   : > { %519 = vperm.xlu2 %1571, %v513_v41   ;;  %v438_v41 = vld [vmem:[#allocation3] sm:$0xff] }
 0x2ae   : > { %v439_v44 = vmul.f32 %v2202_v53, %v438_v41 }
 0x2b5   : > { %702 = vperm.xlu2 %1571, %v696_v46  }
 0x2bd   : > { %724 = vrot.lane.b32.xlu2 %v2149_v4, %s1856_s26 }
 0x2c5   : > { %449 = vperm.xlu2 %1571, %v2202_v53  }
 0x2cd   : > { %537 = vperm.xlu2 %1571, %v1578_v54  }
 0x308   : > { %v604_v57 = vpop.xlane.xlu2 %603 }
 0x309   : > { %v605_v58 = vmax.f32 %v601_v56, %v604_v57 }
 0x30b   : > { %v606_v59 = vsub.f32 %v601_v56, %v605_v58  ;;  %661 = vst.msk [vmem:[#allocation2 + $0x10] sm:$0xff] %vm444_vm5, %v605_v58  ;;  %611 = vperm.xlu1 %1572, %v605_v58  }
 0x30d   : > { %v607_v17 = vmul.f32 1.442695, %v606_v59 }
 0x310   : > { %v520_v60 = vpop.permute.xlu2 %519 }
 0x311   : > { %v522_v61 = vsub.f32 %v507_v29, %v520_v60  ;;  %v709_v29 = vld [vmem:[#allocation3 + $0x18] sm:$0xff] }
 0x313   : > { %v523_v62 = vmul.f32 1.442695, %v522_v61  ;;  %633 = vrot.lane.b32.xlu1 %v2149_v4, %s1855_s23 }
 0x315   : > { %1579 = vpow2.f32 %v523_v62 }
 0x318   : > { %v703_v63 = vpop.permute.xlu2 %702 }
 0x319   : > { %v705_v0 = vsub.f32 %v690_v34, %v703_v63 }
 0x31b   : > { %v1580_v1 = vpop.eup %1579  ;;  %v706_v5 = vmul.f32 1.442695, %v705_v0 }
 0x31c   : > { %1391 = vmatmul.msk.f32.vlgmr.msra.gmra.mxu3 %vm394_vm2, %v1580_v1  ;;  %v528_v6 = vsel %vm394_vm2, %v1580_v1, 0.0 }
 0x31d   : > { %1581 = vpow2.f32 %v706_v5  ;;  %529 = vadd.xlane.f32.xlu0 %v528_v6 }
 0x31e   : > { %1583 = vpow2.f32 %v698_v14 }
 0x31f   : > { %1585 = vpow2.f32 %v607_v17 }
 0x320   : > { %v725_v7 = vpop.permute.xlu2 %724 }
 0x321   : > { %745 = vmatpush.msrb.mxu2 %v725_v7 }
 0x323   : > { %v1582_v8 = vpop.eup %1581 }
 0x324   : > { %1397 = vmatmul.msk.f32.vlgmr.msrb.gmra.mxu2 %vm394_vm2, %v1582_v8  ;;  %v711_v9 = vsel %vm394_vm2, %v1582_v8, 0.0  ;;  %v1584_v15 = vpop.eup %1583 }
 0x325   : > { %712 = vadd.xlane.f32.xlu0 %v711_v9  ;;  %v1586_v18 = vpop.eup %1585  ;;  %v710_v30 = vmul.f32 %v1584_v15, %v709_v29 }
 0x326   : > { %v619_v48 = vmul.f32 %v1586_v18, %v618_v47 }
 0x328   : > { %v450_v11 = vpop.permute.xlu2 %449 }
 0x329   : > { %v452_v12 = vmul.f32 %v450_v11, %v446_v10 }
 0x32b   : > { %v476_v13 = vadd.f32 %v473_v43, %v452_v12 }
 0x32d   : > { %477 = vst.msk [vmem:[#allocation4] sm:$0xff] %vm394_vm2, %v476_v13 }
 0x330   : > { %v538_v34 = vpop.permute.xlu2 %537 }
 0x331   : > { %v540_v35 = vmul.f32 %v538_v34, %v534_v33 }
 0x339   : > { %720 = vperm.xlu0 %1570, %v1584_v15  }
 0x33d   : > { %441 = vadd.xlane.f32.xlu1 %v440_v16 }
 0x356   : > { %629 = vperm.xlu1 %1572, %v1586_v18  }
 0x37d   : > { %v612_v19 = vpop.permute.xlu1 %611 }
 0x37e   : > { %v614_v20 = vsub.f32 %v599_v49, %v612_v19 }
 0x380   : > { %v615_v21 = vmul.f32 1.442695, %v614_v20 }
 0x382   : > { %1587 = vpow2.f32 %v615_v21 }
 0x385   : > { %v634_v22 = vpop.permute.xlu1 %633 }
 0x386   : > { %654 = vmatpush.msrb.mxu3 %v634_v22 }
 0x388   : > { %v1588_v23 = vpop.eup %1587 }
 0x389   : > { %1394 = vmatmul.msk.f32.vlgmr.msrb.gmra.mxu3 %vm394_vm2, %v1588_v23  ;;  %v620_v24 = vsel %vm394_vm2, %v1588_v23, 0.0 }
 0x38a   : > { %621 = vadd.xlane.f32.xlu2 %v620_v24 }
 0x390   : > { %v530_v27 = vpop.xlane.xlu0 %529 }
 0x391   : > { %v531_v28 = vadd.f32 %v530_v27, %v527_v26 }
 0x393   : > { %532 = vst.msk [vmem:[#allocation3 + $0x8] sm:$0xff] %vm444_vm5, %v531_v28 }
 0x398   : > { %v713_v31 = vpop.xlane.xlu0 %712 }
 0x399   : > { %v714_v32 = vadd.f32 %v713_v31, %v710_v30 }
 0x39b   : > { %715 = vst.msk [vmem:[#allocation3 + $0x18] sm:$0xff] %vm444_vm5, %v714_v32 }
 0x39f   : > { %v565_v36 = vpop.f32.mrf.mxu3 }
 0x3a0   : > { %v568_v37 = vadd.f32 %v565_v36, %v540_v35 }
 0x3a2   : > { %569 = vst.msk [vmem:[#allocation4 + $0x8] sm:$0xff] %vm394_vm2, %v568_v37 }
 0x3a7   : > { %v747_v42 = vpop.f32.mrf.mxu2 }
 0x3ab   : > { %v721_v39 = vpop.permute.xlu0 %720 }
 0x3ac   : > { %v723_v40 = vmul.f32 %v721_v39, %v717_v38 }
 0x3ae   : > { %v750_v43 = vadd.f32 %v747_v42, %v723_v40 }
 0x3b0   : > { %751 = vst.msk [vmem:[#allocation4 + $0x18] sm:$0xff] %vm394_vm2, %v750_v43  ;;  %v442_v45 = vpop.xlane.xlu1 %441 }
 0x3b1   : > { %v443_v46 = vadd.f32 %v442_v45, %v439_v44 }
 0x3b3   : > { %445 = vst.msk [vmem:[#allocation3] sm:$0xff] %vm444_vm5, %v443_v46 }
 0x3c8   : > { %v630_v52 = vpop.permute.xlu1 %629 }
 0x3c9   : > { %v632_v54 = vmul.f32 %v630_v52, %v626_v51 }
 0x3fd   : > { %v622_v49 = vpop.xlane.xlu2 %621 }
 0x3fe   : > { %v623_v50 = vadd.f32 %v622_v49, %v619_v48 }
 0x400   : > { %624 = vst.msk [vmem:[#allocation3 + $0x10] sm:$0xff] %vm444_vm5, %v623_v50 }
 0x40c   : > { %v656_v55 = vpop.f32.mrf.mxu3 }
 0x40d   : > { %v659_v56 = vadd.f32 %v656_v55, %v632_v54 }
 0x40f   : > { %660 = vst.msk [vmem:[#allocation4 + $0x10] sm:$0xff] %vm394_vm2, %v659_v56 }
 0x410 PF: > { %p753_p11 = pneg %p2151_p3 }
 0x412   : > { %p754_p5 = pnand %p753_p11, %p349_p9 }
 0x413   : > { %s1858_s27 = smov (!%p754_p5), 120   ;;  %s1859_s29 = smov (!%p754_p5), 112  }
 0x414   : > { %757 = sbr.rel (%p754_p5) target bundleno = 1938 (0x792), region = 56  ;;  %s1860_s20 = smov (!%p754_p5), 104  }
 0x419   : > { %vm758_vm6 = vcmask 64512   ;;  %834 = vmatpush.msra.mxu1 %v2149_v4  ;;  %844 = vrot.lane.b32.xlu1 %v2147_v3, %s1858_s27  ;;  %v1861_v58 = vmov 0   ;;  %v785_v62 = vld [vmem:[#allocation2] sm:$0xff]  ;;  %vm807_vm7 = vcmask 7168   ;;  %v871_v14 = vld [vmem:[#allocation2 + $0x8] sm:$0xff]  ;;  %v1052_v19 = vld [vmem:[#allocation2 + $0x18] sm:$0xff] }
 0x41a   : > { %1398 = vmatpush.xpose.msk.msra.mxu0 %vm758_vm6, %v2147_v3  ;;  %935 = vrot.lane.b32.xlu2 %v2147_v3, %s1859_s29  ;;  %v962_v30 = vld [vmem:[#allocation2 + $0x10] sm:$0xff] }
 0x41b   : > { %1589 = vset.pattern.permute.xlu0 %v1861_v58  ;;  %1590 = vset.pattern.permute.xlu2 %v1861_v58 }
 0x41c   : > { %1591 = vset.pattern.permute.xlu1 %v1861_v58 }
 0x41d   : > { %1399 = vmatmul.msk.f32.vlgmr.msra.gmra.mxu0 %vm758_vm6, %v2143_v2 }
 0x421   : > { %842 = vrot.lane.b32.xlu1 %v2143_v2, %s1858_s27 }
 0x422   : > { %1025 = vrot.lane.b32.xlu2 %v2147_v3, %s1860_s20 }
 0x429   : > { %933 = vrot.lane.b32.xlu1 %v2143_v2, %s1859_s29 }
 0x42a   : > { %1023 = vrot.lane.b32.xlu2 %v2143_v2, %s1860_s20 }
 0x474   : > { %v936_v60 = vpop.permute.xlu2 %935 }
 0x475   : > { %1404 = vmatpush.xpose.msk.msrb.mxu1 %vm758_vm6, %v936_v60 }
 0x47c   : > { %v1026_v61 = vpop.permute.xlu2 %1025 }
 0x47d   : > { %1407 = vmatpush.xpose.msk.msrb.mxu0 %vm758_vm6, %v1026_v61 }
 0x484   : > { %v1024_v2 = vpop.permute.xlu2 %1023 }
 0x485   : > { %1408 = vmatmul.msk.f32.vlgmr.msrb.gmra.mxu0 %vm758_vm6, %v1024_v2  ;;  %v1069_v2 = vld [vmem:[#allocation3 + $0x18] sm:$0xff] }
 0x48b   : > { %v845_v59 = vpop.permute.xlu1 %844 }
 0x48c   : > { %1401 = vmatpush.xpose.msk.msra.mxu2 %vm758_vm6, %v845_v59  ;;  %v888_v59 = vld [vmem:[#allocation3 + $0x8] sm:$0xff] }
 0x493   : > { %v843_v3 = vpop.permute.xlu1 %842 }
 0x494   : > { %1402 = vmatmul.msk.f32.vlgmr.msra.gmra.mxu2 %vm758_vm6, %v843_v3 }
 0x49a   : > { %v782_v53 = vpop.f32.mrf.mxu0 }
 0x49b   : > { %v786_v57 = vsel %vm758_vm6, %v782_v53, -inf  ;;  %v934_v13 = vpop.permute.xlu1 %933 }
 0x49c   : > { %787 = vmax.xlane.f32.xlu0 %v786_v57 }
 0x502   : > { %v1048_v8 = vpop.f32.mrf.mxu0 }
 0x503   : > { %v1053_v10 = vsel %vm758_vm6, %v1048_v8, -inf }
 0x50f   : > { %v788_v63 = vpop.xlane.xlu0 %787 }
 0x510   : > { %v789_v0 = vmax.f32 %v785_v62, %v788_v63 }
 0x512   : > { %v790_v1 = vsub.f32 %v785_v62, %v789_v0  ;;  %841 = vst.msk [vmem:[#allocation2] sm:$0xff] %vm807_vm7, %v789_v0  ;;  %795 = vperm.xlu0 %1589, %v789_v0  }
 0x514   : > { %v791_v25 = vmul.f32 1.442695, %v790_v1  ;;  %v896_v1 = vld [vmem:[#allocation4 + $0x8] sm:$0xff] }
 0x517   : > { %v867_v5 = vpop.f32.mrf.mxu2 }
 0x518   : > { %v872_v6 = vsel %vm758_vm6, %v867_v5, -inf }
 0x519   : > { %873 = vmax.xlane.f32.xlu1 %v872_v6 }
 0x53c   : > { %1054 = vmax.xlane.f32.xlu0 %v1053_v10 }
 0x550   : > { %904 = vrot.lane.b32.xlu0 %v2149_v4, %s1858_s27 }
 0x584   : > { %v796_v7 = vpop.permute.xlu0 %795 }
 0x585   : > { %v798_v9 = vsub.f32 %v782_v53, %v796_v7 }
 0x587   : > { %v799_v11 = vmul.f32 1.442695, %v798_v9  ;;  %v1077_v9 = vld [vmem:[#allocation4 + $0x18] sm:$0xff] }
 0x589   : > { %1592 = vpow2.f32 %v799_v11 }
 0x58a   : > { %1594 = vpow2.f32 %v791_v25 }
 0x58c   : > { %v874_v15 = vpop.xlane.xlu1 %873 }
 0x58d   : > { %v875_v16 = vmax.f32 %v871_v14, %v874_v15 }
 0x58f   : > { %v2256_v12 = vpop.eup %1592  ;;  %v876_v17 = vsub.f32 %v871_v14, %v875_v16  ;;  %932 = vst.msk [vmem:[#allocation2 + $0x8] sm:$0xff] %vm807_vm7, %v875_v16 }
 0x590   : > { %1400 = vmatmul.msk.f32.vlgmr.msra.gmra.mxu1 %vm758_vm6, %v2256_v12  ;;  %v2268_v27 = vpop.eup %1594  ;;  %v803_v50 = vsel %vm758_vm6, %v2256_v12, 0.0  ;;  %v801_v12 = vld [vmem:[#allocation3] sm:$0xff] }
 0x591   : > { %v877_v26 = vmul.f32 1.442695, %v876_v17  ;;  %v802_v15 = vmul.f32 %v2268_v27, %v801_v12 }
 0x593   : > { %1596 = vpow2.f32 %v877_v26 }
 0x598   : > { %1405 = vmatmul.msk.f32.vlgmr.msrb.gmra.mxu1 %vm758_vm6, %v934_v13 }
 0x599   : > { %v1597_v28 = vpop.eup %1596 }
 0x59a   : > { %v889_v60 = vmul.f32 %v1597_v28, %v888_v59 }
 0x5af   : > { %v1055_v20 = vpop.xlane.xlu0 %1054 }
 0x5b0   : > { %v1056_v21 = vmax.f32 %v1052_v19, %v1055_v20 }
 0x5b2   : > { %v1057_v22 = vsub.f32 %v1052_v19, %v1056_v21  ;;  %1112 = vst.msk [vmem:[#allocation2 + $0x18] sm:$0xff] %vm807_vm7, %v1056_v21 }
 0x5b4   : > { %v1058_v48 = vmul.f32 1.442695, %v1057_v22  ;;  %v987_v22 = vld [vmem:[#allocation4 + $0x10] sm:$0xff] }
 0x5c2   : > { %v905_v29 = vpop.permute.xlu0 %904 }
 0x5c3   : > { %925 = vmatpush.msra.mxu3 %v905_v29 }
 0x60d   : > { %v836_v18 = vpop.f32.mrf.mxu1 }
 0x615   : > { %v958_v23 = vpop.f32.mrf.mxu1 }
 0x616   : > { %v963_v24 = vsel %vm758_vm6, %v958_v23, -inf }
 0x617   : > { %964 = vmax.xlane.f32.xlu2 %v963_v24 }
 0x62f   : > { %881 = vperm.xlu2 %1590, %v875_v16  }
 0x637   : > { %1062 = vperm.xlu2 %1590, %v1056_v21  }
 0x63f   : > { %1084 = vrot.lane.b32.xlu2 %v2149_v4, %s1860_s20 }
 0x647   : > { %812 = vperm.xlu2 %1590, %v2268_v27  }
 0x64f   : > { %899 = vperm.xlu2 %1590, %v1597_v28  }
 0x68a   : > { %v965_v31 = vpop.xlane.xlu2 %964 }
 0x68b   : > { %v966_v32 = vmax.f32 %v962_v30, %v965_v31 }
 0x68d   : > { %v967_v33 = vsub.f32 %v962_v30, %v966_v32  ;;  %1022 = vst.msk [vmem:[#allocation2 + $0x10] sm:$0xff] %vm807_vm7, %v966_v32  ;;  %972 = vperm.xlu1 %1591, %v966_v32  }
 0x68f   : > { %v968_v51 = vmul.f32 1.442695, %v967_v33 }
 0x692   : > { %v882_v34 = vpop.permute.xlu2 %881 }
 0x693   : > { %v884_v35 = vsub.f32 %v867_v5, %v882_v34 }
 0x695   : > { %v885_v36 = vmul.f32 1.442695, %v884_v35  ;;  %994 = vrot.lane.b32.xlu1 %v2149_v4, %s1859_s29  ;;  %v809_v4 = vld [vmem:[#allocation4] sm:$0xff] }
 0x697   : > { %1598 = vpow2.f32 %v885_v36 }
 0x69a   : > { %v1063_v37 = vpop.permute.xlu2 %1062 }
 0x69b   : > { %v1065_v38 = vsub.f32 %v1048_v8, %v1063_v37 }
 0x69d   : > { %v1599_v39 = vpop.eup %1598  ;;  %v1066_v40 = vmul.f32 1.442695, %v1065_v38 }
 0x69e   : > { %1403 = vmatmul.msk.f32.vlgmr.msra.gmra.mxu3 %vm758_vm6, %v1599_v39  ;;  %v890_v41 = vsel %vm758_vm6, %v1599_v39, 0.0 }
 0x69f   : > { %1600 = vpow2.f32 %v1066_v40  ;;  %891 = vadd.xlane.f32.xlu0 %v890_v41 }
 0x6a0   : > { %1602 = vpow2.f32 %v1058_v48 }
 0x6a1   : > { %1604 = vpow2.f32 %v968_v51 }
 0x6a2   : > { %v1085_v42 = vpop.permute.xlu2 %1084 }
 0x6a3   : > { %1105 = vmatpush.msrb.mxu2 %v1085_v42 }
 0x6a5   : > { %v1601_v43 = vpop.eup %1600 }
 0x6a6   : > { %1409 = vmatmul.msk.f32.vlgmr.msrb.gmra.mxu2 %vm758_vm6, %v1601_v43  ;;  %v1071_v44 = vsel %vm758_vm6, %v1601_v43, 0.0  ;;  %v1603_v49 = vpop.eup %1602 }
 0x6a7   : > { %1072 = vadd.xlane.f32.xlu0 %v1071_v44  ;;  %v1605_v52 = vpop.eup %1604  ;;  %v1070_v62 = vmul.f32 %v1603_v49, %v1069_v2 }
 0x6aa   : > { %v813_v45 = vpop.permute.xlu2 %812 }
 0x6ab   : > { %v815_v46 = vmul.f32 %v813_v45, %v809_v4 }
 0x6ad   : > { %v839_v47 = vadd.f32 %v836_v18, %v815_v46  ;;  %v979_v18 = vld [vmem:[#allocation3 + $0x10] sm:$0xff] }
 0x6ae   : > { %v980_v19 = vmul.f32 %v1605_v52, %v979_v18 }
 0x6af   : > { %840 = vst.msk [vmem:[#allocation4] sm:$0xff] %vm758_vm6, %v839_v47 }
 0x6b2   : > { %v900_v5 = vpop.permute.xlu2 %899 }
 0x6b3   : > { %v902_v6 = vmul.f32 %v900_v5, %v896_v1 }
 0x6bb   : > { %1080 = vperm.xlu0 %1589, %v1603_v49  }
 0x6bf   : > { %804 = vadd.xlane.f32.xlu1 %v803_v50 }
 0x6d8   : > { %990 = vperm.xlu1 %1591, %v1605_v52  }
 0x6ff   : > { %v973_v54 = vpop.permute.xlu1 %972 }
 0x700   : > { %v975_v55 = vsub.f32 %v958_v23, %v973_v54 }
 0x702   : > { %v976_v56 = vmul.f32 1.442695, %v975_v55 }
 0x704   : > { %1606 = vpow2.f32 %v976_v56 }
 0x707   : > { %v995_v53 = vpop.permute.xlu1 %994 }
 0x708   : > { %1015 = vmatpush.msrb.mxu3 %v995_v53 }
 0x70a   : > { %v1607_v57 = vpop.eup %1606 }
 0x70b   : > { %1406 = vmatmul.msk.f32.vlgmr.msrb.gmra.mxu3 %vm758_vm6, %v1607_v57  ;;  %v981_v58 = vsel %vm758_vm6, %v1607_v57, 0.0 }
 0x70c   : > { %982 = vadd.xlane.f32.xlu2 %v981_v58 }
 0x712   : > { %v892_v3 = vpop.xlane.xlu0 %891 }
 0x713   : > { %v893_v61 = vadd.f32 %v892_v3, %v889_v60 }
 0x715   : > { %894 = vst.msk [vmem:[#allocation3 + $0x8] sm:$0xff] %vm807_vm7, %v893_v61 }
 0x71a   : > { %v1073_v63 = vpop.xlane.xlu0 %1072 }
 0x71b   : > { %v1074_v0 = vadd.f32 %v1073_v63, %v1070_v62 }
 0x71d   : > { %1075 = vst.msk [vmem:[#allocation3 + $0x18] sm:$0xff] %vm807_vm7, %v1074_v0 }
 0x721   : > { %v927_v7 = vpop.f32.mrf.mxu3 }
 0x722   : > { %v930_v8 = vadd.f32 %v927_v7, %v902_v6 }
 0x724   : > { %931 = vst.msk [vmem:[#allocation4 + $0x8] sm:$0xff] %vm758_vm6, %v930_v8 }
 0x729   : > { %v1107_v13 = vpop.f32.mrf.mxu2 }
 0x72d   : > { %v1081_v10 = vpop.permute.xlu0 %1080 }
 0x72e   : > { %v1083_v11 = vmul.f32 %v1081_v10, %v1077_v9 }
 0x730   : > { %v1110_v14 = vadd.f32 %v1107_v13, %v1083_v11 }
 0x732   : > { %1111 = vst.msk [vmem:[#allocation4 + $0x18] sm:$0xff] %vm758_vm6, %v1110_v14  ;;  %v805_v16 = vpop.xlane.xlu1 %804 }
 0x733   : > { %v806_v17 = vadd.f32 %v805_v16, %v802_v15 }
 0x735   : > { %808 = vst.msk [vmem:[#allocation3] sm:$0xff] %vm807_vm7, %v806_v17 }
 0x74a   : > { %v991_v23 = vpop.permute.xlu1 %990 }
 0x74b   : > { %v993_v24 = vmul.f32 %v991_v23, %v987_v22 }
 0x77f   : > { %v983_v20 = vpop.xlane.xlu2 %982 }
 0x780   : > { %v984_v21 = vadd.f32 %v983_v20, %v980_v19 }
 0x782   : > { %985 = vst.msk [vmem:[#allocation3 + $0x10] sm:$0xff] %vm807_vm7, %v984_v21 }
 0x78e   : > { %v1017_v25 = vpop.f32.mrf.mxu3 }
 0x78f   : > { %v1020_v26 = vadd.f32 %v1017_v25, %v993_v24 }
 0x791   : > { %1021 = vst.msk [vmem:[#allocation4 + $0x10] sm:$0xff] %vm758_vm6, %v1020_v26 }
 0x792 PF: > { %s2406_s3 = sld [smem:[#allocation17_spill]] }
 0x798   : > { %p1410_p2 = scmp.ne.s32.totalorder %s2406_s3, 2 }
 0x799   : > { %s1863_s7 = smov (!%p1410_p2), 24   ;;  %s1864_s9 = smov (!%p1410_p2), 8  }
 0x79a   : > { %1116 = sbr.rel (%p1410_p2) target bundleno = 2193 (0x891), region = 60  ;;  %s1865_s28 = smov (!%p1410_p2), 16  }
 0x79f   : > { %v1149_v27 = vld [vmem:[#allocation3 + $0x18] sm:$0xff]  ;;  %v1127_v28 = vld [vmem:[#allocation3 + $0x8] sm:$0xff]  ;;  %v1862_v29 = vmov 0   ;;  %v1117_v30 = vld [vmem:[#allocation3] sm:$0xff]  ;;  %vm1171_vm8 = vcmask 64512   ;;  %vm1173_vm9 = vcmask 130048  }
 0x7a0   : > { %1609 = vset.pattern.permute.xlu1 %v1862_v29  ;;  %1608 = vset.pattern.permute.xlu0 %v1862_v29  ;;  %1610 = vrcp.f32 %v1149_v27  ;;  %v1138_v31 = vld [vmem:[#allocation3 + $0x10] sm:$0xff]  ;;  %v1152_v36 = vld [vmem:[#allocation4 + $0x18] sm:$0xff]  ;;  %v1130_v37 = vld [vmem:[#allocation4 + $0x8] sm:$0xff]  ;;  %vm1175_vm10 = vcmask 195584   ;;  %vm1177_vm11 = vcmask 261120  }
 0x7a1   : > { %1612 = vrcp.f32 %v1127_v28  ;;  %v1141_v42 = vld [vmem:[#allocation4 + $0x10] sm:$0xff]  ;;  %v1119_v45 = vld [vmem:[#allocation4] sm:$0xff] }
 0x7a2   : > { %1614 = vrcp.f32 %v1117_v30 }
 0x7a3   : > { %1616 = vrcp.f32 %v1138_v31 }
 0x7a6   : > { %v1611_v32 = vpop.eup %1610 }
 0x7a7   : > { %v1613_v33 = vpop.eup %1612  ;;  %1155 = vperm.xlu1 %1609, %v1611_v32  }
 0x7a8   : > { %1133 = vperm.xlu0 %1608, %v1613_v33   ;;  %v1615_v34 = vpop.eup %1614 }
 0x7a9   : > { %v1617_v35 = vpop.eup %1616 }
 0x7af   : > { %1122 = vperm.xlu1 %1609, %v1615_v34  }
 0x7b0   : > { %1144 = vperm.xlu0 %1608, %v1617_v35  }
 0x819   : > { %v1156_v38 = vpop.permute.xlu1 %1155 }
 0x81a   : > { %v1158_v39 = vmul.f32 %v1156_v38, %v1152_v36  ;;  %v1134_v40 = vpop.permute.xlu0 %1133 }
 0x81b   : > { %v1136_v41 = vmul.f32 %v1134_v40, %v1130_v37 }
 0x81c   : > { %1168 = vrot.lane.b32.xlu0 %v1158_v39, %s1863_s7 }
 0x81d   : > { %1160 = vrot.lane.b32.xlu2 %v1136_v41, %s1864_s9 }
 0x821   : > { %v1123_v46 = vpop.permute.xlu1 %1122 }
 0x822   : > { %v1145_v43 = vpop.permute.xlu0 %1144  ;;  %v1125_v47 = vmul.f32 %v1123_v46, %v1119_v45 }
 0x823   : > { %v1147_v44 = vmul.f32 %v1145_v43, %v1141_v42 }
 0x825   : > { %1164 = vrot.lane.b32.xlu2 %v1147_v44, %s1865_s28 }
 0x877   : > { %v1161_v4 = vpop.permute.xlu2 %1160 }
 0x878   : > { %v1172_v49 = vsel %vm1171_vm8, %v1125_v47, %v1161_v4 }
 0x87f   : > { %v1165_v48 = vpop.permute.xlu2 %1164 }
 0x880   : > { %v1174_v50 = vsel %vm1173_vm9, %v1172_v49, %v1165_v48 }
 0x88e   : > { %v1169_v51 = vpop.permute.xlu0 %1168 }
 0x88f   : > { %v1176_v52 = vsel %vm1175_vm10, %v1174_v50, %v1169_v51 }
 0x890   : > { %1178 = vst.msk [vmem:[%s2137_s12] sm:$0xff] %vm1177_vm11, %v1176_v52 }
 0x891 PF: > { %s2407_s30 = sld [smem:[#allocation19_spill]]  ;;  %s1194_s11 = sshll.u32 %s2137_s12, 4  ;;  %s1195_s11 = int_to_ptr.vmem [resolvable:$true] %s1194_s11 }
 0x892   : > { %s2408_s18 = sld [smem:[#allocation18_spill]]  ;;  %s1180_s23 = scalar_lea.sflag [#allocation7], %s2105_s14 }
 0x893   : > { %s2409_s6 = sld [smem:[#allocation29_spill]] }
 0x897   : > { %s1412_s5 = sshll.u32 %s2407_s30, 2 }
 0x898   : > { %s1190_s25 = sadd.s32 %s2408_s18, %s1412_s5 }
 0x899   : > { %s1413_s1 = sshll.u32 %s1190_s25, 3  ;;  %s1728_s12 = scalar_lea.hbm %s2409_s6, 64 }
 0x89a   : > { %s1192_s21 = scalar_lea.hbm %s2409_s6, %s1413_s1 }
 0x89b   : > { %s1196_s17 = sshll.u32 %s1192_s21, 4  ;;  %s1197_s17 = int_to_ptr.hbm [resolvable:$true] %s1196_s17 }
 0x89c   : > { %s1722_s26 = sshra.s32 %s1197_s17, 4  ;;  %s1723_s26 = int_to_ptr.hbm [resolvable:$true] %s1722_s26 }
 0x89d   : > { %s1724_s27 = scalar_lea.hbm %s1723_s26, 8  ;;  %p1729_p9 = scmp.lt.s32.totalorder %s1723_s26, %s2409_s6 }
 0x89e   : > { %p1725_p4 = scmp.ne.s32.totalorder %s1723_s26, %s1724_s27  ;;  %p1730_p13 = scmp.lt.s32.totalorder %s1728_s12, %s1724_s27 }
 0x8a0   : > { %p1726_p8 = pnand %p1725_p4, %p2070_p6  ;;  %p1731_p10 = por %p1730_p13, %p1729_p9 }
 0x8a2   : > { %p1727_p7 = pneg %p1726_p8 }
 0x8a4   : > { %p1732_p12 = pnand %p1731_p10, %p1727_p7 }
 0x8a6   : > { %1735 = shalt.err (!%p1732_p12)
}
 0x8a7   : > { %1434 = dma.vmem_to_hbm [thread:$0]  (%p2070_p6), %s1195_s11, 128, %s1197_s17, %s1180_s23  }
 0x8a8 PF: > { %p1451_p3 = scmp.ge.s32.totalorder %s1850_s24, 2  ;;  %s1208_s14 = sand.u32 1, %s1814_s15  }
 0x8a9   : > { %s1209_s9 = scalar_lea.sflag [#allocation7], %s1208_s14 }
 0x8aa   : > { %p1447_p0 = pnand %p1451_p3, %p2074_p1 }
 0x8ac   : > { %p1448_p11 = pneg %p1447_p0 }
 0x8ae   : > { %1797 = dma.done.wait (%p1448_p11), %s1209_s9, 128  }
 0x8af   : > { %1799 = vsyncadd (%p1448_p11), %s1209_s9, 4294967168  ;;  %s22_s24 = sadd.s32 1, %s1850_s24   ;;  %s2411_s8 = sld [smem:[#allocation15_spill]] }
 0x8b0   : > { %p2315_p5 = scmp.ge.s32.totalorder %s22_s24, 26   ;;  %s2412_s14 = sld [smem:[#allocation26_spill]] }
 0x8b1   : > { %s2413_s30 = sld [smem:[#allocation16_spill]]  ;;  %s2420_s12 = smov %s1806_s13 }
 0x8b2   : > { %s2414_s17 = sld [smem:[#allocation27_spill]]  ;;  %s2422_s15 = smov %s1818_s16 }
 0x8b3   : > { %s2415_s18 = sld [smem:[#allocation20_spill]]  ;;  %s2424_s19 = smov %s1842_s22 }
 0x8b4   : > { %s2416_s20 = sld [smem:[#allocation21_spill]] }
 0x8b5   : > { %s2417_s21 = sld [smem:[#allocation22_spill]]  ;;  %s2421_s13 = smov %s2411_s8 }
 0x8b6   : > { %s2418_s10 = sld [smem:[#allocation23_spill]] }
 0x8b7   : > { %s2419_s23 = sld [smem:[#allocation24_spill]]  ;;  %s2423_s16 = smov %s2413_s30 }
 0x8b8   :  { %21 = sbr.rel (!%p2315_p5) target bundleno = 15 (0xf), region = 141 }
 0x8bc   : > { %s2425_s22 = smov %s2418_s10 }
 0x8bd   :  { %1215 = vsyncpa [#allocation6], 1 }
 0x8be   :  { %1217 = vsyncpa [#allocation6 + $0x1], 1 }
 0x8bf   :  { %1218 = vsyncpa [#allocation9], 1 }
 0x8c0   :  { %1220 = vsyncpa [#allocation9 + $0x1], 1 }
 0x8c1   :  { %1221 = vsyncpa [#allocation7], 1 }
 0x8c2   :  { %1223 = vsyncpa [#allocation7 + $0x1], 1 }

</bundles_post_ra>
